<compile_context>
chip_gen: v7x
topology: tpu7x:2x2x1
jax: 0.10.0
libtpu: 0.0.40
codegen_flags: <defaults>
</compile_context>

<pallas_src>
import jax
import jax.numpy as jnp
from jax import lax
from jax.experimental import pallas as pl
from jax.experimental.pallas import tpu as pltpu

_BN_EPS = 1e-5
K_CLASSES = 2
TILE_N_MAX = 2048                       # full-tile intermediates stay < ~10 MiB
_VMEM_LIMIT = 32 * 1024 * 1024


def _round_up(x, m):
    return (x + m - 1) // m * m


# ---------------------------------------------------------------------------
# Kernel 1: pointwise 3-layer MLP (input transform pre-folded into w1) with a
# running max over points.  x is channel-major (6, tile_n); the first matmul
# contracts the 6-channel sublane axis.  Layer-3 bias / relu are deferred to
# the wrapper.  grid = (B, N_pad // tile_n); output block (1, 1, C3) is the
# accumulator across the N axis.
# ---------------------------------------------------------------------------
def _mlp3_max_kernel(x_ref, w1_ref, b1_ref, w2_ref, b2_ref, w3_ref, out_ref):
    x = x_ref[0]                                             # (6, tile_n) bf16
    # (x^T @ W1): contract the channel axis (dim 0) of both operands.
    h = lax.dot_general(x, w1_ref[0], (((0,), (0,)), ((), ())),
                        preferred_element_type=jnp.float32)  # (tile_n, 64)
    h = jnp.maximum(h + b1_ref[...], 0.0)
    h = jnp.dot(h.astype(jnp.bfloat16), w2_ref[...],
                preferred_element_type=jnp.float32)
    h = jnp.maximum(h + b2_ref[...], 0.0)
    h = jnp.dot(h.astype(jnp.bfloat16), w3_ref[...],
                preferred_element_type=jnp.float32)          # (tile_n, 1024)
    tile_max = jnp.max(h, axis=0, keepdims=True)             # (1, 1024)

    @pl.when(pl.program_id(1) == 0)
    def _():
        out_ref[0] = tile_max

    @pl.when(pl.program_id(1) != 0)
    def _():
        out_ref[0] = jnp.maximum(out_ref[0], tile_max)


def mlp3_max(x_cm, w1, b1, w2, b2, w3, *, tile_n):
    """x_cm: (B, 6, N_pad) bf16.  w1: (1 or B, 6, 64) bf16.  Returns (B, 1024) f32
    = max over points of the pre-bias layer-3 activation (bias/relu applied by
    the caller)."""
    B, cin, n_pad = x_cm.shape
    c1, c2, c3 = w2.shape[0], w3.shape[0], w3.shape[1]
    n_tiles = n_pad // tile_n
    w1_idx = (lambda b, n: (b, 0, 0)) if w1.shape[0] == B else (lambda b, n: (0, 0, 0))
    flops = 2 * B * n_pad * (cin * c1 + c1 * c2 + c2 * c3)
    bytes_accessed = (x_cm.size * 2 + w1.size * 2 + w2.size * 2 + w3.size * 2
                      + (b1.size + b2.size) * 4 + B * c3 * 4)
    out = pl.pallas_call(
        _mlp3_max_kernel,
        out_shape=jax.ShapeDtypeStruct((B, 1, c3), jnp.float32),
        grid=(B, n_tiles),
        in_specs=[
            pl.BlockSpec((1, cin, tile_n), lambda b, n: (b, 0, n)),
            pl.BlockSpec((1, cin, c1), w1_idx),
            pl.BlockSpec((1, c1), lambda b, n: (0, 0)),
            pl.BlockSpec((c1, c2), lambda b, n: (0, 0)),
            pl.BlockSpec((1, c2), lambda b, n: (0, 0)),
            pl.BlockSpec((c2, c3), lambda b, n: (0, 0)),
        ],
        out_specs=pl.BlockSpec((1, 1, c3), lambda b, n: (b, 0, 0)),
        compiler_params=pltpu.CompilerParams(
            dimension_semantics=("parallel", "arbitrary"),
            vmem_limit_bytes=_VMEM_LIMIT),
        cost_estimate=pl.CostEstimate(flops=flops, transcendentals=0,
                                      bytes_accessed=bytes_accessed),
    )(x_cm, w1, b1, w2, b2, w3)
    return out[:, 0, :]                                      # (B, C3)


# ---------------------------------------------------------------------------
# Kernel 2: segmentation head per point, tiled over N.  The global-feature
# contribution (g_ref) is a precomputed per-batch row; pointfeat (64 ch) is
# recomputed from the channel-major x tile.  The output is produced directly
# as (k, tile_n) so the store is lane-dense and no wrapper transpose is needed.
# ---------------------------------------------------------------------------
def _seg_head_kernel(x_ref, w1_ref, b1_ref, wp_ref, g_ref, w2_ref, b2_ref,
                     w3_ref, b3_ref, w4t_ref, b4t_ref, out_ref):
    x = x_ref[0]                                             # (6, tile_n) bf16
    pointfeat = jnp.maximum(
        lax.dot_general(x, w1_ref[0], (((0,), (0,)), ((), ())),
                        preferred_element_type=jnp.float32) + b1_ref[...],
        0.0)                                                 # (tile_n, 64)
    s = jnp.dot(pointfeat.astype(jnp.bfloat16), wp_ref[...],
                preferred_element_type=jnp.float32) + g_ref[0]
    s = jnp.maximum(s, 0.0)                                  # (tile_n, 512)
    s = jnp.maximum(
        jnp.dot(s.astype(jnp.bfloat16), w2_ref[...],
                preferred_element_type=jnp.float32) + b2_ref[...], 0.0)
    s = jnp.maximum(
        jnp.dot(s.astype(jnp.bfloat16), w3_ref[...],
                preferred_element_type=jnp.float32) + b3_ref[...], 0.0)   # (tile_n, 128)
    # Final layer emitted channel-major: contract the 128 dim of both operands
    # ('kd,nd->kn') so the (k, tile_n) result stores lane-dense / unmasked.
    o = lax.dot_general(w4t_ref[...], s.astype(jnp.bfloat16),
                        (((1,), (1,)), ((), ())),
                        preferred_element_type=jnp.float32)               # (k, tile_n)
    out_ref[0] = jnp.tanh(o + b4t_ref[...])


def seg_head(x_cm, w1b, b1, wp, g_contrib, w2, b2, w3, b3, w4t, b4t, *, tile_n):
    B, cin, n_pad = x_cm.shape
    c1 = w1b.shape[2]
    c2 = wp.shape[1]
    c3 = w2.shape[1]
    c4 = w3.shape[1]
    k = w4t.shape[0]
    n_tiles = n_pad // tile_n
    w1_idx = (lambda b, n: (b, 0, 0)) if w1b.shape[0] == B else (lambda b, n: (0, 0, 0))
    flops = 2 * B * n_pad * (cin * c1 + c1 * c2 + c2 * c3 + c3 * c4 + c4 * k)
    bytes_accessed = (x_cm.size * 2 + w1b.size * 2 + wp.size * 2 + w2.size * 2
                      + w3.size * 2 + w4t.size * 2 + g_contrib.size * 4
                      + B * n_pad * k * 4)
    return pl.pallas_call(
        _seg_head_kernel,
        out_shape=jax.ShapeDtypeStruct((B, k, n_pad), jnp.float32),
        grid=(B, n_tiles),
        in_specs=[
            pl.BlockSpec((1, cin, tile_n), lambda b, n: (b, 0, n)),
            pl.BlockSpec((1, cin, c1), w1_idx),
            pl.BlockSpec((1, c1), lambda b, n: (0, 0)),
            pl.BlockSpec((c1, c2), lambda b, n: (0, 0)),
            pl.BlockSpec((1, 1, c2), lambda b, n: (b, 0, 0)),
            pl.BlockSpec((c2, c3), lambda b, n: (0, 0)),
            pl.BlockSpec((1, c3), lambda b, n: (0, 0)),
            pl.BlockSpec((c3, c4), lambda b, n: (0, 0)),
            pl.BlockSpec((1, c4), lambda b, n: (0, 0)),
            pl.BlockSpec((k, c4), lambda b, n: (0, 0)),
            pl.BlockSpec((k, 1), lambda b, n: (0, 0)),
        ],
        out_specs=pl.BlockSpec((1, k, tile_n), lambda b, n: (b, 0, n)),
        compiler_params=pltpu.CompilerParams(
            dimension_semantics=("parallel", "parallel"),
            vmem_limit_bytes=_VMEM_LIMIT),
        cost_estimate=pl.CostEstimate(flops=flops,
                                      transcendentals=B * n_pad * k,
                                      bytes_accessed=bytes_accessed),
    )(x_cm, w1b, b1, wp, g_contrib, w2, b2, w3, b3, w4t, b4t)


# ---------------------------------------------------------------------------
# Parameter setup (deterministic, synthetic).  Conv1d(k=1)/Linear weights are
# stored as (Cin, Cout); eval-mode BatchNorm is folded in.
# ---------------------------------------------------------------------------
def init_params(key):
    ks = iter(jax.random.split(key, 40))

    def W(shape, scale=0.1):
        return scale * jax.random.normal(next(ks), shape, jnp.float32)

    s = (1.0 + _BN_EPS) ** -0.5          # gamma=1, beta=0, mean=0, var=1

    def bnfold(w, b):
        return w * s, b * s

    p = {}
    # STN3d conv stack
    p['stn_w1'], p['stn_b1'] = bnfold(W((6, 64)), W((1, 64)))
    p['stn_w2'], p['stn_b2'] = bnfold(W((64, 128)), W((1, 128)))
    p['stn_w3'], p['stn_b3'] = bnfold(W((128, 1024)), W((1, 1024)))
    # STN3d fc head
    p['stn_fw1'], p['stn_fb1'] = bnfold(W((1024, 512)), W((1, 512)))
    p['stn_fw2'], p['stn_fb2'] = bnfold(W((512, 256)), W((1, 256)))
    p['stn_fw3'], p['stn_fb3'] = W((256, 36)), W((1, 36))
    # PointNetfeat conv stack
    p['w1'], p['b1'] = bnfold(W((6, 64)), W((1, 64)))
    p['w2'], p['b2'] = bnfold(W((64, 128)), W((1, 128)))
    p['w3'], p['b3'] = bnfold(W((128, 1024)), W((1, 1024)))
    # Segmentation head (PointNet_IID_3): conv 1088->512->256->128->k
    p['seg_w1'], p['seg_b1'] = bnfold(W((1088, 512)), W((1, 512)))
    p['seg_w2'], p['seg_b2'] = bnfold(W((512, 256)), W((1, 256)))
    p['seg_w3'], p['seg_b3'] = bnfold(W((256, 128)), W((1, 128)))
    p['seg_w4'], p['seg_b4'] = W((128, K_CLASSES)), W((1, K_CLASSES))
    return p


# ---------------------------------------------------------------------------
# PointNet_IID_3.forward (k=2, feature_transform=False)
# ---------------------------------------------------------------------------
def pointnet_iid3_forward(x_bcn, p, *, tile_n_max=TILE_N_MAX):
    B, _, N = x_bcn.shape                            # PyTorch NCW: (B, 6, N)
    x = x_bcn.astype(jnp.float32)

    tile_n = min(tile_n_max, _round_up(N, 256))      # lane-aligned, fills MXU M
    n_pad = _round_up(N, tile_n)
    if n_pad != N:
        # replicate the last real point: exact for the global max, no masking.
        x = jnp.pad(x, ((0, 0), (0, 0), (0, n_pad - N)), mode='edge')
    x_bf = x.astype(jnp.bfloat16)                    # (B, 6, n_pad) channel-major

    bf = lambda a: a.astype(jnp.bfloat16)

    # ---- STN3d conv stack + global max (identity bmm skipped entirely) ----
    g_raw = mlp3_max(x_bf, bf(p['stn_w1'])[None], p['stn_b1'],
                     bf(p['stn_w2']), p['stn_b2'], bf(p['stn_w3']),
                     tile_n=tile_n)                                # (B, 1024)
    g = jax.nn.relu(g_raw + p['stn_b3'])             # deferred bias + relu (exact)

    # ---- STN3d fc head: tiny GEMMs -> plain JAX ----
    h = jax.nn.relu(g @ p['stn_fw1'] + p['stn_fb1'])
    h = jax.nn.relu(h @ p['stn_fw2'] + p['stn_fb2'])
    trans = (h @ p['stn_fw3'] + p['stn_fb3']
             + jnp.eye(6, dtype=jnp.float32).reshape(1, 36)).reshape(B, 6, 6)

    # ---- fold the input transform into conv1: (x @ T) @ W1 == x @ (T @ W1) ----
    w1_fused = bf(jnp.einsum('bij,jk->bik', trans, p['w1']))       # (B, 6, 64)

    # ---- feat conv stack + global max pool (no relu after bn3) ----
    gfeat_raw = mlp3_max(x_bf, w1_fused, p['b1'], bf(p['w2']), p['b2'],
                         bf(p['w3']), tile_n=tile_n)               # (B, 1024)
    gfeat = gfeat_raw + p['b3']                      # deferred bias (exact)

    # ---- segmentation head: split conv1 over [global(1024) | pointfeat(64)] ----
    wg = p['seg_w1'][:1024]                                        # (1024, 512)
    wp = bf(p['seg_w1'][1024:])                                    # (64, 512)
    g_contrib = (gfeat @ wg + p['seg_b1'])[:, None, :]             # (B, 1, 512)

    out = seg_head(x_bf, w1_fused, p['b1'], wp, g_contrib,
                   bf(p['seg_w2']), p['seg_b2'],
                   bf(p['seg_w3']), p['seg_b3'],
                   bf(p['seg_w4'].T), p['seg_b4'].T, tile_n=tile_n)
    out = out[:, :, :N]                                            # (B, k, N)
    return out, trans, None


# ---------------------------------------------------------------------------
# Pure-JAX reference (same bf16 matmul precision) for a numerical sanity check.
# ---------------------------------------------------------------------------
def reference(x_bcn, p):
    B, _, N = x_bcn.shape
    x_bnc = jnp.transpose(x_bcn, (0, 2, 1)).astype(jnp.float32)
    xb = x_bnc.astype(jnp.bfloat16)

    def bmm(a, w):  # bf16 operands, f32 accumulation — matches the kernels
        a16 = a.astype(jnp.bfloat16)
        w16 = w.astype(jnp.bfloat16)
        if w.ndim == 2:
            return jnp.einsum('bni,io->bno', a16, w16,
                              preferred_element_type=jnp.float32)
        return jnp.einsum('bni,bio->bno', a16, w16,
                          preferred_element_type=jnp.float32)

    # STN
    h = jax.nn.relu(bmm(xb, p['stn_w1']) + p['stn_b1'])
    h = jax.nn.relu(bmm(h, p['stn_w2']) + p['stn_b2'])
    h = jax.nn.relu(bmm(h, p['stn_w3']) + p['stn_b3'])
    g = jnp.max(h, axis=1)
    h = jax.nn.relu(g @ p['stn_fw1'] + p['stn_fb1'])
    h = jax.nn.relu(h @ p['stn_fw2'] + p['stn_fb2'])
    trans = (h @ p['stn_fw3'] + p['stn_fb3']
             + jnp.eye(6, dtype=jnp.float32).reshape(1, 36)).reshape(B, 6, 6)

    # feat
    w1_fused = jnp.einsum('bij,jk->bik', trans, p['w1'])
    pointfeat = jax.nn.relu(bmm(xb, w1_fused) + p['b1'])           # (B, N, 64)
    h = jax.nn.relu(bmm(pointfeat, p['w2']) + p['b2'])
    h = bmm(h, p['w3']) + p['b3']
    gfeat = jnp.max(h, axis=1)                                     # (B, 1024)

    # seg head
    wg, wp = p['seg_w1'][:1024], p['seg_w1'][1024:]
    g_contrib = (gfeat @ wg + p['seg_b1'])[:, None, :]
    s = jax.nn.relu(bmm(pointfeat, wp) + g_contrib)
    s = jax.nn.relu(bmm(s, p['seg_w2']) + p['seg_b2'])
    s = jax.nn.relu(bmm(s, p['seg_w3']) + p['seg_b3'])
    s = jnp.tanh(bmm(s, p['seg_w4']) + p['seg_b4'])
    return jnp.transpose(s, (0, 2, 1)), trans


if __name__ == "__main__":
    key = jax.random.PRNGKey(0)
    kx, kp = jax.random.split(key)
    B, N = 2, 16
    x = jax.random.normal(kx, (B, 6, N), jnp.float32)   # NCW like PyTorch
    params = init_params(kp)

    out, trans, trans_feat = pointnet_iid3_forward(x, params)
    jax.block_until_ready((out, trans))

    rout, rtrans = reference(x, params)
    assert out.shape == (B, K_CLASSES, N)
    assert trans.shape == (B, 6, 6)
    assert trans_feat is None
    assert jnp.allclose(trans, rtrans, atol=1e-2, rtol=1e-2), \
        float(jnp.max(jnp.abs(trans - rtrans)))
    assert jnp.allclose(out, rout, atol=1e-2, rtol=1e-2), \
        float(jnp.max(jnp.abs(out - rout)))
    print("KERNEL_OK")
</pallas_src>

<mosaic_0001>
module attributes {stable_mosaic.version = 11 : i64} {
  func.func @_mlp3_max_kernel(%arg0: i32, %arg1: i32, %arg2: memref<1x6x256xbf16, #tpu.memory_space<vmem>>, %arg3: memref<1x6x64xbf16, #tpu.memory_space<vmem>>, %arg4: memref<1x64xf32, #tpu.memory_space<vmem>>, %arg5: memref<64x128xbf16, #tpu.memory_space<vmem>>, %arg6: memref<1x128xf32, #tpu.memory_space<vmem>>, %arg7: memref<128x1024xbf16, #tpu.memory_space<vmem>>, %arg8: memref<1x1x1024xf32, #tpu.memory_space<vmem>>) attributes {dimension_semantics = [#tpu.dimension_semantics<parallel>, #tpu.dimension_semantics<arbitrary>], iteration_bounds = array<i64: 2, 1>, scalar_prefetch = 0 : i64, scratch_operands = 0 : i64, tpu.core_type = #tpu.core_type<tc>, window_params = [{transform_indices = @transform_0, window_bounds = array<i64: 1, 6, 256>}, {pipeline_mode = #tpu.pipeline_mode<synchronous>, transform_indices = @transform_1, window_bounds = array<i64: 1, 6, 64>}, {pipeline_mode = #tpu.pipeline_mode<synchronous>, transform_indices = @transform_2, window_bounds = array<i64: 1, 64>}, {pipeline_mode = #tpu.pipeline_mode<synchronous>, transform_indices = @transform_3, window_bounds = array<i64: 64, 128>}, {pipeline_mode = #tpu.pipeline_mode<synchronous>, transform_indices = @transform_4, window_bounds = array<i64: 1, 128>}, {pipeline_mode = #tpu.pipeline_mode<synchronous>, transform_indices = @transform_5, window_bounds = array<i64: 128, 1024>}, {transform_indices = @transform_6, window_bounds = array<i64: 1, 1, 1024>}]} {
    %c0 = arith.constant 0 : index
    %c0_0 = arith.constant 0 : index
    %c0_1 = arith.constant 0 : index
    %0 = vector.load %arg2[%c0, %c0_0, %c0_1] : memref<1x6x256xbf16, #tpu.memory_space<vmem>>, vector<1x6x256xbf16>
    %1 = vector.shape_cast %0 : vector<1x6x256xbf16> to vector<6x256xbf16>
    %c0_2 = arith.constant 0 : index
    %c0_3 = arith.constant 0 : index
    %c0_4 = arith.constant 0 : index
    %2 = vector.load %arg3[%c0_2, %c0_3, %c0_4] : memref<1x6x64xbf16, #tpu.memory_space<vmem>>, vector<1x6x64xbf16>
    %3 = vector.shape_cast %2 : vector<1x6x64xbf16> to vector<6x64xbf16>
    %cst = arith.constant dense<0.000000e+00> : vector<256x64xf32>
    %4 = tpu.matmul %1, %3, %cst {dimension_numbers = #tpu.dot_dimension_numbers<[0], [0], [1], [1], [0, 1, 1, 1], [], []>} : vector<6x256xbf16>, vector<6x64xbf16>, vector<256x64xf32> -> vector<256x64xf32>
    %c0_5 = arith.constant 0 : index
    %c0_6 = arith.constant 0 : index
    %5 = vector.load %arg4[%c0_5, %c0_6] : memref<1x64xf32, #tpu.memory_space<vmem>>, vector<1x64xf32>
    %6 = vector.broadcast %5 : vector<1x64xf32> to vector<256x64xf32>
    %7 = arith.addf %4, %6 : vector<256x64xf32>
    %cst_7 = arith.constant 0.000000e+00 : f32
    %8 = vector.broadcast %cst_7 : f32 to vector<256x64xf32>
    %9 = arith.maximumf %7, %8 : vector<256x64xf32>
    %10 = arith.truncf %9 : vector<256x64xf32> to vector<256x64xbf16>
    %c0_8 = arith.constant 0 : index
    %c0_9 = arith.constant 0 : index
    %11 = vector.load %arg5[%c0_8, %c0_9] : memref<64x128xbf16, #tpu.memory_space<vmem>>, vector<64x128xbf16>
    %cst_10 = arith.constant dense<0.000000e+00> : vector<256x128xf32>
    %12 = tpu.matmul %10, %11, %cst_10 {dimension_numbers = #tpu.dot_dimension_numbers<[1], [0], [0], [1], [0, 0, 1, 1], [], []>} : vector<256x64xbf16>, vector<64x128xbf16>, vector<256x128xf32> -> vector<256x128xf32>
    %c0_11 = arith.constant 0 : index
    %c0_12 = arith.constant 0 : index
    %13 = vector.load %arg6[%c0_11, %c0_12] : memref<1x128xf32, #tpu.memory_space<vmem>>, vector<1x128xf32>
    %14 = vector.broadcast %13 : vector<1x128xf32> to vector<256x128xf32>
    %15 = arith.addf %12, %14 : vector<256x128xf32>
    %cst_13 = arith.constant 0.000000e+00 : f32
    %16 = vector.broadcast %cst_13 : f32 to vector<256x128xf32>
    %17 = arith.maximumf %15, %16 : vector<256x128xf32>
    %18 = arith.truncf %17 : vector<256x128xf32> to vector<256x128xbf16>
    %c0_14 = arith.constant 0 : index
    %c0_15 = arith.constant 0 : index
    %19 = vector.load %arg7[%c0_14, %c0_15] : memref<128x1024xbf16, #tpu.memory_space<vmem>>, vector<128x1024xbf16>
    %cst_16 = arith.constant dense<0.000000e+00> : vector<256x1024xf32>
    %20 = tpu.matmul %18, %19, %cst_16 {dimension_numbers = #tpu.dot_dimension_numbers<[1], [0], [0], [1], [0, 0, 1, 1], [], []>} : vector<256x128xbf16>, vector<128x1024xbf16>, vector<256x1024xf32> -> vector<256x1024xf32>
    %cst_17 = arith.constant dense<0xFF800000> : vector<1024xf32>
    %21 = vector.multi_reduction <maximumf>, %20, %cst_17 [0] : vector<256x1024xf32> to vector<1024xf32>
    %22 = vector.shape_cast %21 : vector<1024xf32> to vector<1x1024xf32>
    %c0_i32 = arith.constant 0 : i32
    %23 = arith.cmpi eq, %arg1, %c0_i32 : i32
    %24 = arith.extui %23 : i1 to i32
    %c0_i32_18 = arith.constant 0 : i32
    %25 = arith.cmpi ne, %24, %c0_i32_18 : i32
    scf.if %25 {
      %c0_21 = arith.constant 0 : index
      %c0_22 = arith.constant 0 : index
      %c0_23 = arith.constant 0 : index
      %29 = vector.load %arg8[%c0_21, %c0_22, %c0_23] : memref<1x1x1024xf32, #tpu.memory_space<vmem>>, vector<1x1x1024xf32>
      %30 = vector.shape_cast %29 : vector<1x1x1024xf32> to vector<1x1024xf32>
      %31 = vector.shape_cast %22 : vector<1x1024xf32> to vector<1x1x1024xf32>
      tpu.vector_store %arg8[%c0_21, %c0_22, %c0_23], %31 {strides = array<i32>} : memref<1x1x1024xf32, #tpu.memory_space<vmem>>, vector<1x1x1024xf32>,
    } else {
    }
    %c0_i32_19 = arith.constant 0 : i32
    %26 = arith.cmpi ne, %arg1, %c0_i32_19 : i32
    %27 = arith.extui %26 : i1 to i32
    %c0_i32_20 = arith.constant 0 : i32
    %28 = arith.cmpi ne, %27, %c0_i32_20 : i32
    scf.if %28 {
      %c0_21 = arith.constant 0 : index
      %c0_22 = arith.constant 0 : index
      %c0_23 = arith.constant 0 : index
      %29 = vector.load %arg8[%c0_21, %c0_22, %c0_23] : memref<1x1x1024xf32, #tpu.memory_space<vmem>>, vector<1x1x1024xf32>
      %30 = vector.shape_cast %29 : vector<1x1x1024xf32> to vector<1x1024xf32>
      %31 = arith.maximumf %30, %22 : vector<1x1024xf32>
      %c0_24 = arith.constant 0 : index
      %c0_25 = arith.constant 0 : index
      %c0_26 = arith.constant 0 : index
      %32 = vector.load %arg8[%c0_24, %c0_25, %c0_26] : memref<1x1x1024xf32, #tpu.memory_space<vmem>>, vector<1x1x1024xf32>
      %33 = vector.shape_cast %32 : vector<1x1x1024xf32> to vector<1x1024xf32>
      %34 = vector.shape_cast %31 : vector<1x1024xf32> to vector<1x1x1024xf32>
      tpu.vector_store %arg8[%c0_24, %c0_25, %c0_26], %34 {strides = array<i32>} : memref<1x1x1024xf32, #tpu.memory_space<vmem>>, vector<1x1x1024xf32>,
    } else {
    }
    return
  }
  func.func @transform_0(%arg0: i32, %arg1: i32) -> (i32, i32, i32) {
    %c0_i32 = arith.constant 0 : i32
    %c0_i32_0 = arith.constant 0 : i32
    return %arg0, %c0_i32, %arg1 : i32, i32, i32
  }
  func.func @transform_1(%arg0: i32, %arg1: i32) -> (i32, i32, i32) {
    %c0_i32 = arith.constant 0 : i32
    %c0_i32_0 = arith.constant 0 : i32
    %c0_i32_1 = arith.constant 0 : i32
    %c0_i32_2 = arith.constant 0 : i32
    return %c0_i32, %c0_i32_0, %c0_i32_1 : i32, i32, i32
  }
  func.func @transform_2(%arg0: i32, %arg1: i32) -> (i32, i32) {
    %c0_i32 = arith.constant 0 : i32
    %c0_i32_0 = arith.constant 0 : i32
    %c0_i32_1 = arith.constant 0 : i32
    return %c0_i32, %c0_i32_0 : i32, i32
  }
  func.func @transform_3(%arg0: i32, %arg1: i32) -> (i32, i32) {
    %c0_i32 = arith.constant 0 : i32
    %c0_i32_0 = arith.constant 0 : i32
    %c0_i32_1 = arith.constant 0 : i32
    return %c0_i32, %c0_i32_0 : i32, i32
  }
  func.func @transform_4(%arg0: i32, %arg1: i32) -> (i32, i32) {
    %c0_i32 = arith.constant 0 : i32
    %c0_i32_0 = arith.constant 0 : i32
    %c0_i32_1 = arith.constant 0 : i32
    return %c0_i32, %c0_i32_0 : i32, i32
  }
  func.func @transform_5(%arg0: i32, %arg1: i32) -> (i32, i32) {
    %c0_i32 = arith.constant 0 : i32
    %c0_i32_0 = arith.constant 0 : i32
    %c0_i32_1 = arith.constant 0 : i32
    return %c0_i32, %c0_i32_0 : i32, i32
  }
  func.func @transform_6(%arg0: i32, %arg1: i32) -> (i32, i32, i32) {
    %c0_i32 = arith.constant 0 : i32
    %c0_i32_0 = arith.constant 0 : i32
    %c0_i32_1 = arith.constant 0 : i32
    return %arg0, %c0_i32, %c0_i32_0 : i32, i32, i32
  }
}

</mosaic_0001>

<bundles_post_ra>
// kernel: tpu_custom_call.1
= control target key start
LH: loop header
LB: loop body
LE: loop exit
PB: predicated region body
PF: predicated region fallthrough
CT: control target
= control target key end

     0   :  { %11 = vsyncpa [#allocation3], 0  ;;  %s3502_s0 = inlined_call_operand.vmem [shape: bf16[2,6,256], index: 0, kind: input, shape index: {}]   ;;  %s3503_s1 = inlined_call_operand.vmem [shape: bf16[1,6,64], index: 1, kind: input, shape index: {}]   ;;  %s3504_s2 = inlined_call_operand.vmem [shape: f32[1,64], index: 2, kind: input, shape index: {}]   ;;  %s3505_s3 = inlined_call_operand.vmem [shape: bf16[64,128], index: 3, kind: input, shape index: {}]   ;;  %s3506_s4 = inlined_call_operand.vmem [shape: f32[1,128], index: 4, kind: input, shape index: {}]   ;;  %s3507_s5 = inlined_call_operand.hbm [shape: bf16[128,1024], index: 5, kind: input, shape index: {}]   ;;  %s3508_s6 = inlined_call_operand.hbm [shape: f32[2,1,1024], index: 6, kind: output, shape index: {}]  }
   0x1   :  { %12 = vsyncpa [#allocation4], 0 }
   0x2   :  { %14 = vsyncpa [#allocation4 + $0x1], 0  ;;  %s3043_s21 = smov 0   ;;  %s3045_s22 = smov 0  }
   0x3   :  { %s3047_s23 = smov 0   ;;  %s3049_s24 = smov 0  }
   0x4   :  { %s3051_s25 = smov 0   ;;  %s3053_s26 = smov 0  }
   0x5 LB: > { %s2581_s27 = sadd.s32 4294967295, %s3000_s26   ;;  %s2582_s28 = sadd.s32 4294967294, %s3000_s26   ;;  %s3000_s26 = sphi %s3053_s26, %s20_s26   ;;  %s2996_s25 = sphi %s3051_s25, %s3526_s25   ;;  %s2992_s24 = sphi %s3049_s24, %s3525_s24   ;;  %s2988_s23 = sphi %s3047_s23, %s3524_s23   ;;  %s2984_s22 = sphi %s3045_s22, %s3523_s22   ;;  %s2980_s21 = sphi %s3043_s21, %s3522_s21  }
   0x6   : > { %s32_s29 = sadd.s32 1, %s2996_s25  ;;  %s172_s30 = sadd.s32 1, %s2988_s23 }
   0x7   : > { %p34_p0 = scmp.ge.s32.totalorder %s32_s29, 2  ;;  %p182_p1 = scmp.ne.s32.totalorder %s2988_s23, %s2984_s22 }
   0x8   : > { %p183_p2 = scmp.eq.s32.totalorder %s2581_s27, 1  ;;  %p188_p3 = scmp.ne.s32.totalorder %s2984_s22, %s2980_s21 }
   0x9   : > { %s3528_s29 = smov (%p34_p0, %s32_s29), 0  ;;  %p189_p5 = scmp.eq.s32.totalorder %s2582_s28, 1 }
   0xa   : > { %p3083_p4 = por %p183_p2, %p182_p1  ;;  %s169_s8 = ssub.s32 %s2996_s25, %s3528_s29 }
   0xb   : > { %p2583_p6 = scmp.ge.s32.totalorder %s3000_s26, 1  ;;  %p170_p7 = scmp.eq.s32.totalorder %s169_s8, 0 }
   0xc   : > { %s3513_s7 = scalar_select %p3083_p4, 1, 0 }
   0xd   : > { %p3090_p8 = por %p189_p5, %p188_p3  ;;  %p196_p9 = scmp.lt.s32.totalorder %s3000_s26, 3 }
   0xe   : > { %s3096_s10 = scalar_select %p170_p7, %s2988_s23, %s172_s30  }
   0xf   : > { %s3514_s9 = scalar_select %p3090_p8, 1, 0 }
  0x10   : > { %p3098_p10 = pnand %p2583_p6, %p196_p9  ;;  %p3102_p11 = scmp.eq.s32.totalorder %s2581_s27, 0 }
  0x11   : > { %s3002_s13 = smov [#allocation2]   ;;  %s2890_s18 = scalar_lea.hbm %s3507_s5, 8192 }
  0x12   : > { %s3515_s11 = scalar_select %p3098_p10, 1, 0 }
  0x13   : > { %s3516_s12 = scalar_select %p3102_p11, 1, 0 }
  0x14   : > { %p2820_p12 = pneg %p3098_p10  ;;  %s220_s14 = sshll.u32 %s3002_s13, 4  ;;  %s221_s14 = int_to_ptr.vmem [resolvable:$true] %s220_s14 }
  0x15   : > { %p2891_p0 = scmp.ne.s32.totalorder %s3507_s5, %s2890_s18  ;;  %p2897_p5 = scmp.lt.u32.totalorder %s2890_s18, %s3507_s5 }
  0x16   : > { %p3110_p13 = pnand %p3102_p11, %p2820_p12 }
  0x18   : > { %p2892_p1 = pneg %p3110_p13 }
  0x1a   : > { %p2893_p2 = pnand %p2892_p1, %p2891_p0 }
  0x1c   : > { %p2894_p3 = pneg %p2893_p2 }
  0x1e   : > { %p2899_p6 = pnand %p2897_p5, %p2894_p3 }
  0x20   : > { %2902 = shalt.err (!%p2899_p6)
}
  0x21   : > { %s2903_s30 = scalar_lea.vmem %s221_s14, 8192  ;;  %p2911_p8 = scmp.lt.s32.totalorder %s221_s14, %s221_s14 }
  0x22   : > { %p2904_p7 = scmp.ne.s32.totalorder %s221_s14, %s2903_s30  ;;  %p2912_p4 = scmp.lt.s32.totalorder %s2903_s30, %s2903_s30 }
  0x24   : > { %p2906_p9 = pnand %p2904_p7, %p2892_p1  ;;  %p2913_p11 = por %p2912_p4, %p2911_p8 }
  0x26   : > { %p2907_p12 = pneg %p2906_p9 }
  0x28   : > { %p2914_p10 = pnand %p2913_p11, %p2907_p12 }
  0x2a   : > { %2917 = shalt.err (!%p2914_p10)
}
  0x2b   : > { %s3003_s8 = smov 512   ;;  %s3004_s13 = smov 32  }
  0x2c   : > { %2823 = dma.hbm_to_vmem [thread:$0]  (!%p3110_p13), %s3507_s5, 8192, %s221_s14, [#allocation3], %s3003_s8, %s3003_s8, %s3004_s13  }
  0x2d   : > { %p3518_p0 = scmp.ne.s32.totalorder %s3515_s11, 0 }
  0x2e   : > { %p3519_p2 = scmp.ne.s32.totalorder (!%p3518_p0), %s3516_s12, 0 }
  0x2f   : > { %249 = sbr.rel (%p3518_p0) target bundleno = 1115 (0x45b), region = 44 }
  0x36   : > { %2971 = dma.done.wait (%p3519_p2), [#allocation3], 8192  }
  0x37   : > { %2973 = vsyncadd (%p3519_p2), [#allocation3], 4294959104  ;;  %p284_p4 = scmp.lt.s32.totalorder %s2992_s24, 1  ;;  %vm391_vm0 = vcmask 1042432   ;;  %v295_v1 = vld [vmem:[%s3503_s1] sm:$0x7] }
  0x38   : > { %2813 = vmatprep.subr.msk.bf16.mxu0 %vm391_vm0, %v295_v1  ;;  %v393_v3 = vsel %vm391_vm0, %v295_v1, 0  ;;  %v2886_v5 = vld [vmem:[%s3505_s3] sm:$0xff]   ;;  %v2887_v6 = vld [vmem:[%s3505_s3 + $0x8] sm:$0xff]   ;;  %vm342_vm1 = vcmask 48128   ;;  %v2888_v23 = vld [vmem:[%s3505_s3 + $0x10] sm:$0xff]   ;;  %vm643_vm2 = vcmask 523264  }
  0x39   : > { %s285_s18 = scalar_select %p284_p4, %s2992_s24, 1  ;;  %2740 = vmatpush3.bf16.msra.mxu0 %v393_v3  ;;  %2773 = vmatprep.subr.bf16.mxu1 %v2886_v5  ;;  %v2889_v24 = vld [vmem:[%s3505_s3 + $0x18] sm:$0xff]   ;;  %v901_v25 = vld [vmem:[#allocation2] sm:$0xff]  ;;  %v3172_v27 = vld [vmem:[#allocation2 + $0x8] sm:$0xff] }
  0x3a   : > { %2774 = vmatpush3.bf16.msra.mxu1 %v2886_v5  ;;  %v905_v26 = vld [vmem:[#allocation2 + $0x20] sm:$0xff]  ;;  %v3174_v30 = vld [vmem:[#allocation2 + $0x28] sm:$0xff]  ;;  %s280_s14 = sand.u32 1, %s2984_s22   ;;  %s2701_s12 = sshll.u32 %s2992_s24, 7 }
  0x3b   : > { %s2700_s19 = sshll.u32 %s285_s18, 3  ;;  %2775 = vmatprep.subr.bf16.mxu1 %v2887_v6  ;;  %v2631_v28 = vcombine.low %v901_v25, %v905_v26  ;;  %v2632_v29 = vcombine.high %v901_v25, %v905_v26  ;;  %v909_v31 = vld [vmem:[#allocation2 + $0x40] sm:$0xff]  ;;  %v2633_v33 = vcombine.low %v3172_v27, %v3174_v30  ;;  %v2634_v34 = vcombine.high %v3172_v27, %v3174_v30  ;;  %s2588_s11 = sshll.u32 %s280_s14, 3 }
  0x3c   : > { %s291_s27 = scalar_lea.vmem %s3502_s0, %s2700_s19  ;;  %v913_v32 = vld [vmem:[#allocation2 + $0x60] sm:$0xff]  ;;  %s282_s28 = scalar_lea.vmem [#allocation5], %s2588_s11 }
  0x3d   : > { %v294_v0 = vld [vmem:[%s291_s27] sm:$0x77]  ;;  %v2640_v35 = vcombine.high %v909_v31, %v913_v32  ;;  %1285 = vmatprep.subr.bf16.mxu0 %v2632_v29  ;;  %v2639_v38 = vcombine.low %v909_v31, %v913_v32  ;;  %v930_v29 = vld [vmem:[#allocation2 + $0xe8] sm:$0xff]  ;;  %s2496_s30 = sshll.u32 %s282_s28, 4  ;;  %s3455_s16 = scalar_lea.hbm %s3508_s6, %s2701_s12  ;;  %s3457_s30 = int_to_ptr.vmem [resolvable:$true] %s2496_s30 }
  0x3e   : > { %v2592_v2 = vcombine.low %v294_v0, %v294_v0  ;;  %v2593_v4 = vcombine.high %v294_v0, %v294_v0  ;;  %2776 = vmatpush3.bf16.msra.mxu1 %v2887_v6  ;;  %v917_v36 = vld [vmem:[#allocation2 + $0x80] sm:$0xff]  ;;  %v910_v6 = vld [vmem:[#allocation2 + $0x48] sm:$0xff]  ;;  %s2482_s24 = scalar_lea.sflag [#allocation4], %s280_s14  ;;  %s2918_s17 = scalar_lea.vmem %s3457_s30, 128 }
  0x3f   : > { %2777 = vmatprep.subr.bf16.mxu1 %v2888_v23  ;;  %v921_v37 = vld [vmem:[#allocation2 + $0xa0] sm:$0xff]  ;;  %p2919_p8 = scmp.ne.s32.totalorder %s3457_s30, %s2918_s17  ;;  %p3520_p10 = scmp.ne.s32.totalorder %s3513_s7, 0 }
  0x40   : > { %310 = vxpose.xlu0.c.b16.start.end [1/1] (short) %v2592_v2, 128  ;;  %v2648_v39 = vcombine.high %v917_v36, %v921_v37  ;;  %v925_v40 = vld [vmem:[#allocation2 + $0xc0] sm:$0xff]  ;;  %v2647_v42 = vcombine.low %v917_v36, %v921_v37  ;;  %s3007_s18 = smov [#allocation5]  }
  0x41   : > { %v929_v41 = vld [vmem:[#allocation2 + $0xe0] sm:$0xff]  ;;  %p2920_p11 = pnand %p2919_p8, %p3520_p10  ;;  %s2922_s19 = sshll.u32 %s3007_s18, 4  ;;  %s2923_s19 = int_to_ptr.vmem [resolvable:$false] %s2922_s19 }
  0x42   : > { %2778 = vmatpush3.bf16.msra.mxu1 %v2888_v23  ;;  %v2656_v43 = vcombine.high %v925_v40, %v929_v41  ;;  %v933_v44 = vld [vmem:[#allocation2 + $0x100] sm:$0xff]  ;;  %v2655_v46 = vcombine.low %v925_v40, %v929_v41  ;;  %s2924_s20 = scalar_lea.vmem %s2923_s19, 256  ;;  %p2925_p1 = scmp.lt.s32.totalorder %s3457_s30, %s2923_s19 }
  0x43   : > { %2779 = vmatprep.subr.bf16.mxu1 %v2889_v24  ;;  %v937_v45 = vld [vmem:[#allocation2 + $0x120] sm:$0xff]  ;;  %p2921_p13 = pneg %p2920_p11  ;;  %p2926_p3 = scmp.lt.s32.totalorder %s2924_s20, %s2918_s17 }
  0x44   : > { %v2664_v47 = vcombine.high %v933_v44, %v937_v45  ;;  %v941_v48 = vld [vmem:[#allocation2 + $0x140] sm:$0xff]  ;;  %v2663_v50 = vcombine.low %v933_v44, %v937_v45 }
  0x45   : > { %v945_v49 = vld [vmem:[#allocation2 + $0x160] sm:$0xff]  ;;  %p2927_p5 = por %p2926_p3, %p2925_p1 }
  0x46   : > { %2780 = vmatpush3.bf16.msra.mxu1 %v2889_v24  ;;  %v2672_v51 = vcombine.high %v941_v48, %v945_v49  ;;  %v949_v52 = vld [vmem:[#allocation2 + $0x180] sm:$0xff]  ;;  %v2671_v54 = vcombine.low %v941_v48, %v945_v49  ;;  %v942_v49 = vld [vmem:[#allocation2 + $0x148] sm:$0xff] }
  0x47   : > { %1478 = vmatprep.subr.bf16.mxu1 %v2634_v34  ;;  %v953_v53 = vld [vmem:[#allocation2 + $0x1a0] sm:$0xff]  ;;  %p2928_p6 = pnand %p2927_p5, %p2921_p13 }
  0x48   : > { %v2680_v55 = vcombine.high %v949_v52, %v953_v53  ;;  %v2679_v56 = vcombine.low %v949_v52, %v953_v53  ;;  %v3183_v57 = vld [vmem:[%s3504_s2] ss:$0 sm:$0xff] }
  0x5d   : > { %326 = vxpose.xlu0.c.b16.start.end [1/1] (short) %v2593_v4, 128 }
  0xa6   : > { %v318_v7 = vpop.trf.xlu0 }
  0xa7   : > { %2741 = vmatprep.mubr.msk.bf16.mxu0 %vm342_vm1, %v318_v7  ;;  %v914_v7 = vld [vmem:[#allocation2 + $0x68] sm:$0xff] }
  0xa8   : > { %v2641_v23 = vcombine.low %v910_v6, %v914_v7 }
  0xaa   : > { %v319_v8 = vpop.trf.xlu0 }
  0xab   : > { %2742 = vmatmul.mubr.msk.bf16.vlgmr.msra.gmra.mrb[0].mxu0 %vm342_vm1, %v319_v8 }
  0xac   : > { %1286 = vmatpush1.bf16.msra.mxu0 %v2631_v28  ;;  %v926_v28 = vld [vmem:[#allocation2 + $0xc8] sm:$0xff] }
  0xad   : > { %1287 = vmatprep.subr.bf16.mxu0 %v2640_v35  ;;  %v2657_v45 = vcombine.low %v926_v28, %v930_v29 }
  0xae   : > { %v320_v9 = vpop.trf.xlu0 }
  0xaf   : > { %2745 = vmatprep.mubr.msk.bf16.mxu0 %vm342_vm1, %v320_v9 }
  0xb0   : > { %1288 = vmatpush1.bf16.msra.mxu0 %v2639_v38  ;;  %v2658_v38 = vcombine.high %v926_v28, %v930_v29 }
  0xb1   : > { %1289 = vmatprep.subr.bf16.mxu0 %v2648_v39  ;;  %v938_v39 = vld [vmem:[#allocation2 + $0x128] sm:$0xff] }
  0xb2   : > { %v321_v10 = vpop.trf.xlu0 }
  0xb3   : > { %2746 = vmatmul.mubr.msk.bf16.gmra.mrb[4].mxu0 %vm342_vm1, %v321_v10 }
  0xb4   : > { %1290 = vmatpush1.bf16.msra.mxu0 %v2647_v42 }
  0xb5   : > { %1291 = vmatprep.subr.bf16.mxu0 %v2656_v43 }
  0xb6   : > { %v322_v11 = vpop.trf.xlu0 }
  0xb7   : > { %2749 = vmatprep.mubr.msk.bf16.mxu0 %vm342_vm1, %v322_v11 }
  0xb8   : > { %1292 = vmatpush1.bf16.msra.mxu0 %v2655_v46 }
  0xb9   : > { %1293 = vmatprep.subr.bf16.mxu0 %v2664_v47 }
  0xba   : > { %v323_v12 = vpop.trf.xlu0 }
  0xbb   : > { %2750 = vmatmul.mubr.msk.bf16.gmra.mrb[8].mxu0 %vm342_vm1, %v323_v12 }
  0xbc   : > { %1294 = vmatpush1.bf16.msra.mxu0 %v2663_v50  ;;  %v946_v50 = vld [vmem:[#allocation2 + $0x168] sm:$0xff] }
  0xbd   : > { %1295 = vmatprep.subr.bf16.mxu0 %v2672_v51 }
  0xbe   : > { %v324_v13 = vpop.trf.xlu0 }
  0xbf   : > { %2753 = vmatprep.mubr.msk.bf16.mxu0 %vm342_vm1, %v324_v13  ;;  %v2642_v13 = vcombine.high %v910_v6, %v914_v7 }
  0xc0   : > { %1296 = vmatpush1.bf16.msra.mxu0 %v2671_v54 }
  0xc1   : > { %1297 = vmatprep.subr.bf16.mxu0 %v2680_v55 }
  0xc2   : > { %v325_v14 = vpop.trf.xlu0 }
  0xc3   : > { %2754 = vmatmul.mubr.msk.bf16.gmra.mrb[12].mxu0 %vm342_vm1, %v325_v14 }
  0xc4   : > { %1298 = vmatpush1.bf16.msra.mxu0 %v2679_v56 }
  0xc6   : > { %v334_v15 = vpop.trf.xlu0 }
  0xc7   : > { %2757 = vmatprep.mubr.msk.bf16.mxu0 %vm342_vm1, %v334_v15 }
  0xca   : > { %v335_v16 = vpop.trf.xlu0 }
  0xcb   : > { %2758 = vmatmul.mubr.msk.bf16.gmra.mrb[16].mxu0 %vm342_vm1, %v335_v16  ;;  %v918_v16 = vld [vmem:[#allocation2 + $0x88] sm:$0xff] }
  0xce   : > { %v336_v17 = vpop.trf.xlu0 }
  0xcf   : > { %2761 = vmatprep.mubr.msk.bf16.mxu0 %vm342_vm1, %v336_v17  ;;  %v922_v17 = vld [vmem:[#allocation2 + $0xa8] sm:$0xff] }
  0xd0   : > { %v2650_v25 = vcombine.high %v918_v16, %v922_v17  ;;  %v2649_v35 = vcombine.low %v918_v16, %v922_v17 }
  0xd2   : > { %v337_v18 = vpop.trf.xlu0 }
  0xd3   : > { %2762 = vmatmul.mubr.msk.bf16.gmra.mrb[20].mxu0 %vm342_vm1, %v337_v18 }
  0xd6   : > { %v338_v19 = vpop.trf.xlu0 }
  0xd7   : > { %2765 = vmatprep.mubr.msk.bf16.mxu0 %vm342_vm1, %v338_v19 }
  0xda   : > { %v339_v20 = vpop.trf.xlu0 }
  0xdb   : > { %2766 = vmatmul.mubr.msk.bf16.gmra.mrb[24].mxu0 %vm342_vm1, %v339_v20 }
  0xde   : > { %v340_v21 = vpop.trf.xlu0 }
  0xdf   : > { %2769 = vmatprep.mubr.msk.bf16.mxu0 %vm342_vm1, %v340_v21 }
  0xe2   : > { %v341_v22 = vpop.trf.xlu0 }
  0xe3   : > { %2770 = vmatmul.mubr.msk.bf16.gmra.mrb[28].mxu0 %vm342_vm1, %v341_v22 }
 0x17e   : > { %v2743_v58 = vpop.f32.mrb[0].mxu0 }
 0x17f   : > { %v438_v59 = vadd.f32 %v2743_v58, %v3183_v57  ;;  %v429_v60 = vpop.f32.mrb[1].mxu0  ;;  %v2674_v58 = vcombine.high %v942_v49, %v946_v50 }
 0x180   : > { %v430_v61 = vadd.f32 %v3183_v57, %v429_v60  ;;  %v2744_v62 = vpop.f32.mrb[2].mxu0 }
 0x181   : > { %v441_v63 = vadd.f32 %v2744_v62, %v3183_v57  ;;  %v432_v0 = vpop.f32.mrb[3].mxu0  ;;  %v558_v2 = vmax.f32 %v438_v59, 0.0  ;;  %v954_v62 = vld [vmem:[#allocation2 + $0x1a8] sm:$0xff] }
 0x182   : > { %v433_v1 = vadd.f32 %v3183_v57, %v432_v0  ;;  %v556_v4 = vmax.f32 %v430_v61, 0.0  ;;  %v950_v61 = vld [vmem:[#allocation2 + $0x188] sm:$0xff] }
 0x183   : > { %v559_v3 = vmax.f32 %v441_v63, 0.0  ;;  %v2682_v6 = vcombine.high %v950_v61, %v954_v62 }
 0x184   : > { %v557_v5 = vmax.f32 %v433_v1, 0.0 }
 0x185   : > { %v589_v8 = vpack.c.bf16 %v559_v3, %v558_v2 }
 0x186   : > { %v2747_v9 = vpop.f32.mrb[4].mxu0  ;;  %v588_v10 = vpack.c.bf16 %v557_v5, %v556_v4  ;;  %v2673_v4 = vcombine.low %v942_v49, %v946_v50 }
 0x187   : > { %v454_v11 = vadd.f32 %v2747_v9, %v3183_v57  ;;  %v445_v12 = vpop.f32.mrb[5].mxu0 }
 0x188   : > { %v446_v14 = vadd.f32 %v3183_v57, %v445_v12  ;;  %2781 = vmatprep.mubr.msk.bf16.mxu1 %vm643_vm2, %v588_v10  ;;  %v2748_v15 = vpop.f32.mrb[6].mxu0 }
 0x189   : > { %v562_v18 = vmax.f32 %v454_v11, 0.0  ;;  %v457_v19 = vadd.f32 %v2748_v15, %v3183_v57  ;;  %2782 = vmatmul.mubr.msk.bf16.vlgmr.msra.gmra.mrb[0].mxu1 %vm643_vm2, %v589_v8  ;;  %v448_v20 = vpop.f32.mrb[7].mxu0  ;;  %v2681_v11 = vcombine.low %v950_v61, %v954_v62 }
 0x18a   : > { %v560_v21 = vmax.f32 %v446_v14, 0.0  ;;  %v449_v22 = vadd.f32 %v3183_v57, %v448_v20  ;;  %1479 = vmatpush1.bf16.msra.mxu1 %v2633_v33  ;;  %v934_v33 = vld [vmem:[#allocation2 + $0x108] sm:$0xff] }
 0x18b   : > { %v563_v24 = vmax.f32 %v457_v19, 0.0  ;;  %1480 = vmatprep.subr.bf16.mxu1 %v2642_v13  ;;  %v2666_v47 = vcombine.high %v934_v33, %v938_v39  ;;  %v2665_v54 = vcombine.low %v934_v33, %v938_v39 }
 0x18c   : > { %v561_v26 = vmax.f32 %v449_v22, 0.0 }
 0x18d   : > { %v591_v31 = vpack.c.bf16 %v563_v24, %v562_v18 }
 0x18e   : > { %v590_v32 = vpack.c.bf16 %v561_v26, %v560_v21  ;;  %v2751_v34 = vpop.f32.mrb[8].mxu0  ;;  %1481 = vmatpush1.bf16.msra.mxu1 %v2641_v23 }
 0x18f   : > { %v470_v36 = vadd.f32 %v2751_v34, %v3183_v57  ;;  %v461_v37 = vpop.f32.mrb[9].mxu0  ;;  %1482 = vmatprep.subr.bf16.mxu1 %v2650_v25 }
 0x190   : > { %2785 = vmatprep.mubr.msk.bf16.mxu1 %vm643_vm2, %v590_v32  ;;  %v462_v27 = vadd.f32 %v3183_v57, %v461_v37  ;;  %v2752_v30 = vpop.f32.mrb[10].mxu0 }
 0x191   : > { %2786 = vmatmul.mubr.msk.bf16.gmra.mrb[4].mxu1 %vm643_vm2, %v591_v31  ;;  %v566_v40 = vmax.f32 %v470_v36, 0.0  ;;  %v473_v41 = vadd.f32 %v2752_v30, %v3183_v57  ;;  %v464_v42 = vpop.f32.mrb[11].mxu0 }
 0x192   : > { %v564_v43 = vmax.f32 %v462_v27, 0.0  ;;  %v465_v44 = vadd.f32 %v3183_v57, %v464_v42  ;;  %1483 = vmatpush1.bf16.msra.mxu1 %v2649_v35 }
 0x193   : > { %v567_v46 = vmax.f32 %v473_v41, 0.0  ;;  %1484 = vmatprep.subr.bf16.mxu1 %v2658_v38 }
 0x194   : > { %v565_v48 = vmax.f32 %v465_v44, 0.0 }
 0x195   : > { %v593_v51 = vpack.c.bf16 %v567_v46, %v566_v40 }
 0x196   : > { %v592_v52 = vpack.c.bf16 %v565_v48, %v564_v43  ;;  %v2755_v53 = vpop.f32.mrb[12].mxu0  ;;  %1485 = vmatpush1.bf16.msra.mxu1 %v2657_v45 }
 0x197   : > { %v486_v55 = vadd.f32 %v2755_v53, %v3183_v57  ;;  %v477_v56 = vpop.f32.mrb[13].mxu0  ;;  %1486 = vmatprep.subr.bf16.mxu1 %v2666_v47 }
 0x198   : > { %2789 = vmatprep.mubr.msk.bf16.mxu1 %vm643_vm2, %v592_v52  ;;  %v478_v59 = vadd.f32 %v3183_v57, %v477_v56  ;;  %v2756_v60 = vpop.f32.mrb[14].mxu0 }
 0x199   : > { %2790 = vmatmul.mubr.msk.bf16.gmra.mrb[8].mxu1 %vm643_vm2, %v593_v51  ;;  %v570_v63 = vmax.f32 %v486_v55, 0.0  ;;  %v489_v0 = vadd.f32 %v2756_v60, %v3183_v57  ;;  %v480_v1 = vpop.f32.mrb[15].mxu0 }
 0x19a   : > { %v568_v2 = vmax.f32 %v478_v59, 0.0  ;;  %v481_v3 = vadd.f32 %v3183_v57, %v480_v1  ;;  %1487 = vmatpush1.bf16.msra.mxu1 %v2665_v54 }
 0x19b   : > { %v571_v5 = vmax.f32 %v489_v0, 0.0  ;;  %1488 = vmatprep.subr.bf16.mxu1 %v2674_v58 }
 0x19c   : > { %v569_v7 = vmax.f32 %v481_v3, 0.0 }
 0x19d   : > { %v595_v8 = vpack.c.bf16 %v571_v5, %v570_v63  ;;  %v961_v5 = vld [vmem:[#allocation2 + $0x1e0] sm:$0xff] }
 0x19e   : > { %v594_v9 = vpack.c.bf16 %v569_v7, %v568_v2  ;;  %v2759_v10 = vpop.f32.mrb[16].mxu0  ;;  %1489 = vmatpush1.bf16.msra.mxu1 %v2673_v4  ;;  %v957_v4 = vld [vmem:[#allocation2 + $0x1c0] sm:$0xff] }
 0x19f   : > { %v502_v12 = vadd.f32 %v2759_v10, %v3183_v57  ;;  %v493_v13 = vpop.f32.mrb[17].mxu0  ;;  %1490 = vmatprep.subr.bf16.mxu1 %v2682_v6  ;;  %v958_v6 = vld [vmem:[#allocation2 + $0x1c8] sm:$0xff]  ;;  %v2687_v7 = vcombine.low %v957_v4, %v961_v5 }
 0x1a0   : > { %2793 = vmatprep.mubr.msk.bf16.mxu1 %vm643_vm2, %v594_v9  ;;  %v494_v14 = vadd.f32 %v3183_v57, %v493_v13  ;;  %v2760_v15 = vpop.f32.mrb[18].mxu0  ;;  %v962_v9 = vld [vmem:[#allocation2 + $0x1e8] sm:$0xff]  ;;  %v907_v13 = vld [vmem:[#allocation2 + $0x30] sm:$0xff] }
 0x1a1   : > { %2794 = vmatmul.mubr.msk.bf16.gmra.mrb[12].mxu1 %vm643_vm2, %v595_v8  ;;  %v574_v16 = vmax.f32 %v502_v12, 0.0  ;;  %v505_v17 = vadd.f32 %v2760_v15, %v3183_v57  ;;  %v496_v18 = vpop.f32.mrb[19].mxu0  ;;  %v2688_v8 = vcombine.high %v957_v4, %v961_v5  ;;  %v2689_v10 = vcombine.low %v958_v6, %v962_v9  ;;  %v903_v12 = vld [vmem:[#allocation2 + $0x10] sm:$0xff] }
 0x1a2   : > { %v572_v19 = vmax.f32 %v494_v14, 0.0  ;;  %v497_v20 = vadd.f32 %v3183_v57, %v496_v18  ;;  %1491 = vmatpush1.bf16.msra.mxu1 %v2681_v11  ;;  %v2690_v11 = vcombine.high %v958_v6, %v962_v9  ;;  %v904_v14 = vld [vmem:[#allocation2 + $0x18] sm:$0xff]  ;;  %v2635_v15 = vcombine.low %v903_v12, %v907_v13 }
 0x1a3   : > { %v575_v21 = vmax.f32 %v505_v17, 0.0  ;;  %1299 = vmatprep.subr.bf16.mxu0 %v2688_v8  ;;  %v908_v17 = vld [vmem:[#allocation2 + $0x38] sm:$0xff] }
 0x1a4   : > { %v573_v22 = vmax.f32 %v497_v20, 0.0  ;;  %1492 = vmatprep.subr.bf16.mxu1 %v2690_v11  ;;  %1300 = vmatpush1.bf16.msra.mxu0 %v2687_v7  ;;  %v2637_v18 = vcombine.low %v904_v14, %v908_v17  ;;  %v3241_v20 = vld [vmem:[%s3506_s4] ss:$0 sm:$0xff]  ;;  %v935_v11 = vld [vmem:[#allocation2 + $0x110] sm:$0xff] }
 0x1a5   : > { %v597_v23 = vpack.c.bf16 %v575_v21, %v574_v16  ;;  %v2636_v16 = vcombine.high %v903_v12, %v907_v13 }
 0x1a6   : > { %v596_v24 = vpack.c.bf16 %v573_v22, %v572_v19  ;;  %v2763_v25 = vpop.f32.mrb[20].mxu0  ;;  %1493 = vmatpush1.bf16.msra.mxu1 %v2689_v10  ;;  %v2638_v19 = vcombine.high %v904_v14, %v908_v17  ;;  %v939_v14 = vld [vmem:[#allocation2 + $0x130] sm:$0xff] }
 0x1a7   : > { %v518_v26 = vadd.f32 %v2763_v25, %v3183_v57  ;;  %v509_v28 = vpop.f32.mrb[21].mxu0  ;;  %1671 = vmatprep.subr.bf16.mxu0 %v2636_v16  ;;  %v940_v16 = vld [vmem:[#allocation2 + $0x138] sm:$0xff] }
 0x1a8   : > { %2797 = vmatprep.mubr.msk.bf16.mxu1 %vm643_vm2, %v596_v24  ;;  %v510_v29 = vadd.f32 %v3183_v57, %v509_v28  ;;  %v2764_v31 = vpop.f32.mrb[22].mxu0  ;;  %1864 = vmatprep.subr.bf16.mxu1 %v2638_v19 }
 0x1a9   : > { %2798 = vmatmul.mubr.msk.bf16.gmra.mrb[16].mxu1 %vm643_vm2, %v597_v23  ;;  %v578_v32 = vmax.f32 %v518_v26, 0.0  ;;  %v521_v34 = vadd.f32 %v2764_v31, %v3183_v57  ;;  %v512_v35 = vpop.f32.mrb[23].mxu0 }
 0x1aa   : > { %v576_v36 = vmax.f32 %v510_v29, 0.0  ;;  %v513_v37 = vadd.f32 %v3183_v57, %v512_v35 }
 0x1ab   : > { %v579_v38 = vmax.f32 %v521_v34, 0.0  ;;  %v911_v34 = vld [vmem:[#allocation2 + $0x50] sm:$0xff] }
 0x1ac   : > { %v577_v27 = vmax.f32 %v513_v37, 0.0  ;;  %v915_v37 = vld [vmem:[#allocation2 + $0x70] sm:$0xff] }
 0x1ad   : > { %v599_v30 = vpack.c.bf16 %v579_v38, %v578_v32  ;;  %v912_v38 = vld [vmem:[#allocation2 + $0x58] sm:$0xff] }
 0x1ae   : > { %v598_v33 = vpack.c.bf16 %v577_v27, %v576_v36  ;;  %v2767_v39 = vpop.f32.mrb[24].mxu0  ;;  %v916_v27 = vld [vmem:[#allocation2 + $0x78] sm:$0xff] }
 0x1af   : > { %v534_v40 = vadd.f32 %v2767_v39, %v3183_v57  ;;  %v525_v41 = vpop.f32.mrb[25].mxu0 }
 0x1b0   : > { %2801 = vmatprep.mubr.msk.bf16.mxu1 %vm643_vm2, %v598_v33  ;;  %v526_v42 = vadd.f32 %v3183_v57, %v525_v41  ;;  %v2768_v43 = vpop.f32.mrb[26].mxu0 }
 0x1b1   : > { %2802 = vmatmul.mubr.msk.bf16.gmra.mrb[20].mxu1 %vm643_vm2, %v599_v30  ;;  %v582_v44 = vmax.f32 %v534_v40, 0.0  ;;  %v537_v45 = vadd.f32 %v2768_v43, %v3183_v57  ;;  %v528_v46 = vpop.f32.mrb[27].mxu0  ;;  %v919_v40 = vld [vmem:[#allocation2 + $0x90] sm:$0xff]  ;;  %v2644_v43 = vcombine.high %v911_v34, %v915_v37 }
 0x1b2   : > { %v580_v47 = vmax.f32 %v526_v42, 0.0  ;;  %v529_v48 = vadd.f32 %v3183_v57, %v528_v46  ;;  %v920_v46 = vld [vmem:[#allocation2 + $0x98] sm:$0xff] }
 0x1b3   : > { %v583_v49 = vmax.f32 %v537_v45, 0.0  ;;  %v923_v45 = vld [vmem:[#allocation2 + $0xb0] sm:$0xff] }
 0x1b4   : > { %v581_v50 = vmax.f32 %v529_v48, 0.0  ;;  %v2651_v5 = vcombine.low %v919_v40, %v923_v45 }
 0x1b5   : > { %v601_v51 = vpack.c.bf16 %v583_v49, %v582_v44  ;;  %v2646_v44 = vcombine.high %v912_v38, %v916_v27 }
 0x1b6   : > { %v600_v52 = vpack.c.bf16 %v581_v50, %v580_v47  ;;  %v2771_v53 = vpop.f32.mrb[28].mxu0  ;;  %v924_v47 = vld [vmem:[#allocation2 + $0xb8] sm:$0xff] }
 0x1b7   : > { %v550_v54 = vadd.f32 %v2771_v53, %v3183_v57  ;;  %v541_v55 = vpop.f32.mrb[29].mxu0  ;;  %v2643_v53 = vcombine.low %v911_v34, %v915_v37  ;;  %v2653_v6 = vcombine.low %v920_v46, %v924_v47  ;;  %v944_v34 = vld [vmem:[#allocation2 + $0x158] sm:$0xff] }
 0x1b8   : > { %2805 = vmatprep.mubr.msk.bf16.mxu1 %vm643_vm2, %v600_v52  ;;  %v542_v56 = vadd.f32 %v3183_v57, %v541_v55  ;;  %v2772_v58 = vpop.f32.mrb[30].mxu0 }
 0x1b9   : > { %2806 = vmatmul.mubr.msk.bf16.gmra.mrb[24].mxu1 %vm643_vm2, %v601_v51  ;;  %v586_v59 = vmax.f32 %v550_v54, 0.0  ;;  %v553_v60 = vadd.f32 %v2772_v58, %v3183_v57  ;;  %v544_v61 = vpop.f32.mrb[31].mxu0  ;;  %v2645_v54 = vcombine.low %v912_v38, %v916_v27  ;;  %v2652_v58 = vcombine.high %v919_v40, %v923_v45 }
 0x1ba   : > { %v584_v62 = vmax.f32 %v542_v56, 0.0  ;;  %v545_v63 = vadd.f32 %v3183_v57, %v544_v61  ;;  %v3005_v57 = vmov 0   ;;  %v927_v61 = vld [vmem:[#allocation2 + $0xd0] sm:$0xff]  ;;  %v2667_v27 = vcombine.low %v935_v11, %v939_v14 }
 0x1bb   : > { %v587_v0 = vmax.f32 %v553_v60, 0.0  ;;  %1317 = vmatprep.mubr.bf16.mxu0 %v3005_v57 }
 0x1bc   : > { %v585_v1 = vmax.f32 %v545_v63, 0.0  ;;  %v931_v63 = vld [vmem:[#allocation2 + $0xf0] sm:$0xff] }
 0x1bd   : > { %v603_v2 = vpack.c.bf16 %v587_v0, %v586_v59  ;;  %v2654_v59 = vcombine.high %v920_v46, %v924_v47  ;;  %v928_v0 = vld [vmem:[#allocation2 + $0xd8] sm:$0xff]  ;;  %v2660_v9 = vcombine.high %v927_v61, %v931_v63  ;;  %v955_v47 = vld [vmem:[#allocation2 + $0x1b0] sm:$0xff] }
 0x1be   : > { %v602_v3 = vpack.c.bf16 %v585_v1, %v584_v62  ;;  %v932_v1 = vld [vmem:[#allocation2 + $0xf8] sm:$0xff] }
 0x1bf   : > { %v2662_v10 = vcombine.high %v928_v0, %v932_v1 }
 0x1c0   : > { %2809 = vmatprep.mubr.msk.bf16.mxu1 %vm643_vm2, %v602_v3 }
 0x1c1   : > { %2810 = vmatmul.mubr.msk.bf16.gmra.mrb[28].mxu1 %vm643_vm2, %v603_v2 }
 0x1c2   : > { %1510 = vmatprep.mubr.bf16.mxu1 %v3005_v57 }
 0x25c   : > { %v2783_v21 = vpop.f32.mrb[0].mxu1 }
 0x25d   : > { %v735_v22 = vadd.f32 %v2783_v21, %v3241_v20  ;;  %v726_v23 = vpop.f32.mrb[1].mxu1 }
 0x25e   : > { %v727_v24 = vadd.f32 %v3241_v20, %v726_v23  ;;  %v2784_v25 = vpop.f32.mrb[2].mxu1  ;;  %v2659_v23 = vcombine.low %v927_v61, %v931_v63  ;;  %v959_v61 = vld [vmem:[#allocation2 + $0x1d0] sm:$0xff] }
 0x25f   : > { %v738_v26 = vadd.f32 %v2784_v25, %v3241_v20  ;;  %v729_v28 = vpop.f32.mrb[3].mxu1  ;;  %v855_v31 = vmax.f32 %v735_v22, 0.0  ;;  %v963_v63 = vld [vmem:[#allocation2 + $0x1f0] sm:$0xff] }
 0x260   : > { %v730_v29 = vadd.f32 %v3241_v20, %v729_v28  ;;  %v853_v35 = vmax.f32 %v727_v24, 0.0  ;;  %v2661_v24 = vcombine.low %v928_v0, %v932_v1  ;;  %v960_v0 = vld [vmem:[#allocation2 + $0x1d8] sm:$0xff] }
 0x261   : > { %v856_v32 = vmax.f32 %v738_v26, 0.0  ;;  %v2668_v26 = vcombine.high %v935_v11, %v939_v14  ;;  %v964_v1 = vld [vmem:[#allocation2 + $0x1f8] sm:$0xff]  ;;  %v2692_v11 = vcombine.high %v959_v61, %v963_v63 }
 0x262   : > { %v854_v36 = vmax.f32 %v730_v29, 0.0  ;;  %v943_v29 = vld [vmem:[#allocation2 + $0x150] sm:$0xff] }
 0x263   : > { %v3247_v30 = vpack.c.bf16 %v856_v32, %v855_v31  ;;  %v947_v32 = vld [vmem:[#allocation2 + $0x170] sm:$0xff] }
 0x264   : > { %v3249_v33 = vpack.c.bf16 %v854_v36, %v853_v35  ;;  %v2787_v39 = vpop.f32.mrb[4].mxu1  ;;  %v948_v35 = vld [vmem:[#allocation2 + $0x178] sm:$0xff] }
 0x265   : > { %v751_v41 = vadd.f32 %v2787_v39, %v3241_v20  ;;  %v742_v42 = vpop.f32.mrb[5].mxu1 }
 0x266   : > { %v743_v48 = vadd.f32 %v3241_v20, %v742_v42  ;;  %1318 = vmatmul.mubr.bf16.vlgmr.msra.gmra.mrb[32].mxu0 %v3249_v33  ;;  %1511 = vmatmul.mubr.bf16.vlgmr.msra.gmra.mrb[32].mxu1 %v3249_v33  ;;  %v2788_v49 = vpop.f32.mrb[6].mxu1  ;;  %v2676_v42 = vcombine.high %v943_v29, %v947_v32 }
 0x267   : > { %v859_v50 = vmax.f32 %v751_v41, 0.0  ;;  %1672 = vmatpush1.bf16.msra.mxu0 %v2635_v15  ;;  %1865 = vmatpush1.bf16.msra.mxu1 %v2637_v18  ;;  %v754_v51 = vadd.f32 %v2788_v49, %v3241_v20  ;;  %v745_v52 = vpop.f32.mrb[7].mxu1  ;;  %v936_v15 = vld [vmem:[#allocation2 + $0x118] sm:$0xff] }
 0x268   : > { %v857_v55 = vmax.f32 %v743_v48, 0.0  ;;  %v746_v56 = vadd.f32 %v3241_v20, %v745_v52  ;;  %1327 = vmatprep.mubr.bf16.mxu0 %v3005_v57  ;;  %1520 = vmatprep.mubr.bf16.mxu1 %v3005_v57  ;;  %v2670_v28 = vcombine.high %v936_v15, %v940_v16  ;;  %v2669_v39 = vcombine.low %v936_v15, %v940_v16  ;;  %v952_v48 = vld [vmem:[#allocation2 + $0x198] sm:$0xff] }
 0x269   : > { %v860_v60 = vmax.f32 %v754_v51, 0.0  ;;  %1673 = vmatprep.subr.bf16.mxu0 %v2644_v43  ;;  %1866 = vmatprep.subr.bf16.mxu1 %v2646_v44  ;;  %v2678_v43 = vcombine.high %v944_v34, %v948_v35  ;;  %v951_v44 = vld [vmem:[#allocation2 + $0x190] sm:$0xff]  ;;  %v956_v49 = vld [vmem:[#allocation2 + $0x1b8] sm:$0xff] }
 0x26a   : > { %v858_v62 = vmax.f32 %v746_v56, 0.0  ;;  %v2677_v56 = vcombine.low %v944_v34, %v948_v35 }
 0x26b   : > { %v3259_v2 = vpack.c.bf16 %v860_v60, %v859_v50  ;;  %1674 = vmatpush1.bf16.msra.mxu0 %v2643_v53  ;;  %1867 = vmatpush1.bf16.msra.mxu1 %v2645_v54  ;;  %v2686_v60 = vcombine.high %v952_v48, %v956_v49 }
 0x26c   : > { %v3261_v3 = vpack.c.bf16 %v858_v62, %v857_v55  ;;  %v2791_v4 = vpop.f32.mrb[8].mxu1  ;;  %1675 = vmatprep.subr.bf16.mxu0 %v2652_v58  ;;  %1868 = vmatprep.subr.bf16.mxu1 %v2654_v59  ;;  %v2675_v55 = vcombine.low %v943_v29, %v947_v32  ;;  %v2684_v59 = vcombine.high %v951_v44, %v955_v47 }
 0x26d   : > { %v767_v7 = vadd.f32 %v2791_v4, %v3241_v20  ;;  %v758_v8 = vpop.f32.mrb[9].mxu1 }
 0x26e   : > { %1328 = vmatmul.mubr.bf16.gmra.mrb[36].mxu0 %v3247_v30  ;;  %1521 = vmatmul.mubr.bf16.gmra.mrb[36].mxu1 %v3247_v30  ;;  %v759_v12 = vadd.f32 %v3241_v20, %v758_v8  ;;  %v2792_v13 = vpop.f32.mrb[10].mxu1  ;;  %v2685_v8 = vcombine.low %v952_v48, %v956_v49 }
 0x26f   : > { %v863_v17 = vmax.f32 %v767_v7, 0.0  ;;  %1337 = vmatprep.mubr.bf16.mxu0 %v3005_v57  ;;  %1530 = vmatprep.mubr.bf16.mxu1 %v3005_v57  ;;  %v770_v18 = vadd.f32 %v2792_v13, %v3241_v20  ;;  %v761_v19 = vpop.f32.mrb[11].mxu1  ;;  %v2683_v7 = vcombine.low %v951_v44, %v955_v47 }
 0x270   : > { %v861_v21 = vmax.f32 %v759_v12, 0.0  ;;  %v762_v22 = vadd.f32 %v3241_v20, %v761_v19  ;;  %1676 = vmatpush1.bf16.msra.mxu0 %v2651_v5  ;;  %1869 = vmatpush1.bf16.msra.mxu1 %v2653_v6  ;;  %v2694_v12 = vcombine.high %v960_v0, %v964_v1 }
 0x271   : > { %v864_v25 = vmax.f32 %v770_v18, 0.0  ;;  %1677 = vmatprep.subr.bf16.mxu0 %v2660_v9  ;;  %1870 = vmatprep.subr.bf16.mxu1 %v2662_v10 }
 0x272   : > { %v862_v31 = vmax.f32 %v762_v22, 0.0  ;;  %v2693_v22 = vcombine.low %v960_v0, %v964_v1 }
 0x273   : > { %v3271_v36 = vpack.c.bf16 %v864_v25, %v863_v17 }
 0x274   : > { %v3273_v37 = vpack.c.bf16 %v862_v31, %v861_v21  ;;  %v2795_v38 = vpop.f32.mrb[12].mxu1  ;;  %1678 = vmatpush1.bf16.msra.mxu0 %v2659_v23  ;;  %1871 = vmatpush1.bf16.msra.mxu1 %v2661_v24  ;;  %v2691_v21 = vcombine.low %v959_v61, %v963_v63 }
 0x275   : > { %v783_v40 = vadd.f32 %v2795_v38, %v3241_v20  ;;  %v774_v41 = vpop.f32.mrb[13].mxu1  ;;  %1679 = vmatprep.subr.bf16.mxu0 %v2668_v26  ;;  %1872 = vmatprep.subr.bf16.mxu1 %v2670_v28 }
 0x276   : > { %1338 = vmatmul.mubr.bf16.gmra.mrb[40].mxu0 %v3261_v3  ;;  %1531 = vmatmul.mubr.bf16.gmra.mrb[40].mxu1 %v3261_v3  ;;  %v775_v45 = vadd.f32 %v3241_v20, %v774_v41  ;;  %v2796_v46 = vpop.f32.mrb[14].mxu1 }
 0x277   : > { %1347 = vmatprep.mubr.bf16.mxu0 %v3005_v57  ;;  %1540 = vmatprep.mubr.bf16.mxu1 %v3005_v57  ;;  %v867_v50 = vmax.f32 %v783_v40, 0.0  ;;  %v786_v51 = vadd.f32 %v2796_v46, %v3241_v20  ;;  %v777_v52 = vpop.f32.mrb[15].mxu1 }
 0x278   : > { %v865_v53 = vmax.f32 %v775_v45, 0.0  ;;  %v778_v54 = vadd.f32 %v3241_v20, %v777_v52  ;;  %1680 = vmatpush1.bf16.msra.mxu0 %v2667_v27  ;;  %1873 = vmatpush1.bf16.msra.mxu1 %v2669_v39 }
 0x279   : > { %v868_v58 = vmax.f32 %v786_v51, 0.0  ;;  %1681 = vmatprep.subr.bf16.mxu0 %v2676_v42  ;;  %1874 = vmatprep.subr.bf16.mxu1 %v2678_v43 }
 0x27a   : > { %v866_v62 = vmax.f32 %v778_v54, 0.0 }
 0x27b   : > { %v3283_v4 = vpack.c.bf16 %v868_v58, %v867_v50 }
 0x27c   : > { %v3285_v5 = vpack.c.bf16 %v866_v62, %v865_v53  ;;  %v2799_v6 = vpop.f32.mrb[16].mxu1  ;;  %1682 = vmatpush1.bf16.msra.mxu0 %v2675_v55  ;;  %1875 = vmatpush1.bf16.msra.mxu1 %v2677_v56 }
 0x27d   : > { %v799_v9 = vadd.f32 %v2799_v6, %v3241_v20  ;;  %v790_v10 = vpop.f32.mrb[17].mxu1  ;;  %1683 = vmatprep.subr.bf16.mxu0 %v2684_v59  ;;  %1876 = vmatprep.subr.bf16.mxu1 %v2686_v60 }
 0x27e   : > { %1348 = vmatmul.mubr.bf16.gmra.mrb[44].mxu0 %v3259_v2  ;;  %1541 = vmatmul.mubr.bf16.gmra.mrb[44].mxu1 %v3259_v2  ;;  %v791_v13 = vadd.f32 %v3241_v20, %v790_v10  ;;  %v2800_v14 = vpop.f32.mrb[18].mxu1 }
 0x27f   : > { %1357 = vmatprep.mubr.bf16.mxu0 %v3005_v57  ;;  %1550 = vmatprep.mubr.bf16.mxu1 %v3005_v57  ;;  %v871_v15 = vmax.f32 %v799_v9, 0.0  ;;  %v802_v16 = vadd.f32 %v2800_v14, %v3241_v20  ;;  %v793_v17 = vpop.f32.mrb[19].mxu1 }
 0x280   : > { %v869_v18 = vmax.f32 %v791_v13, 0.0  ;;  %v794_v19 = vadd.f32 %v3241_v20, %v793_v17  ;;  %1684 = vmatpush1.bf16.msra.mxu0 %v2683_v7  ;;  %1877 = vmatpush1.bf16.msra.mxu1 %v2685_v8 }
 0x281   : > { %v872_v23 = vmax.f32 %v802_v16, 0.0  ;;  %1685 = vmatprep.subr.bf16.mxu0 %v2692_v11  ;;  %1878 = vmatprep.subr.bf16.mxu1 %v2694_v12 }
 0x282   : > { %v870_v24 = vmax.f32 %v794_v19, 0.0 }
 0x283   : > { %v3295_v25 = vpack.c.bf16 %v872_v23, %v871_v15 }
 0x284   : > { %v3297_v26 = vpack.c.bf16 %v870_v24, %v869_v18  ;;  %v2803_v28 = vpop.f32.mrb[20].mxu1  ;;  %1686 = vmatpush1.bf16.msra.mxu0 %v2691_v21  ;;  %1879 = vmatpush1.bf16.msra.mxu1 %v2693_v22 }
 0x285   : > { %v815_v29 = vadd.f32 %v2803_v28, %v3241_v20  ;;  %v806_v31 = vpop.f32.mrb[21].mxu1 }
 0x286   : > { %1358 = vmatmul.mubr.bf16.gmra.mrb[48].mxu0 %v3273_v37  ;;  %1551 = vmatmul.mubr.bf16.gmra.mrb[48].mxu1 %v3273_v37  ;;  %v807_v32 = vadd.f32 %v3241_v20, %v806_v31  ;;  %v2804_v34 = vpop.f32.mrb[22].mxu1 }
 0x287   : > { %1367 = vmatprep.mubr.bf16.mxu0 %v3005_v57  ;;  %1560 = vmatprep.mubr.bf16.mxu1 %v3005_v57  ;;  %v875_v35 = vmax.f32 %v815_v29, 0.0  ;;  %v818_v38 = vadd.f32 %v2804_v34, %v3241_v20  ;;  %v809_v27 = vpop.f32.mrb[23].mxu1 }
 0x288   : > { %v873_v39 = vmax.f32 %v807_v32, 0.0  ;;  %v810_v40 = vadd.f32 %v3241_v20, %v809_v27 }
 0x289   : > { %v876_v41 = vmax.f32 %v818_v38, 0.0 }
 0x28a   : > { %v874_v42 = vmax.f32 %v810_v40, 0.0 }
 0x28b   : > { %v3307_v43 = vpack.c.bf16 %v876_v41, %v875_v35 }
 0x28c   : > { %v3309_v44 = vpack.c.bf16 %v874_v42, %v873_v39  ;;  %v2807_v45 = vpop.f32.mrb[24].mxu1 }
 0x28d   : > { %v831_v46 = vadd.f32 %v2807_v45, %v3241_v20  ;;  %v822_v47 = vpop.f32.mrb[25].mxu1 }
 0x28e   : > { %1368 = vmatmul.mubr.bf16.gmra.mrb[52].mxu0 %v3271_v36  ;;  %1561 = vmatmul.mubr.bf16.gmra.mrb[52].mxu1 %v3271_v36  ;;  %v823_v48 = vadd.f32 %v3241_v20, %v822_v47  ;;  %v2808_v49 = vpop.f32.mrb[26].mxu1 }
 0x28f   : > { %1377 = vmatprep.mubr.bf16.mxu0 %v3005_v57  ;;  %1570 = vmatprep.mubr.bf16.mxu1 %v3005_v57  ;;  %v879_v50 = vmax.f32 %v831_v46, 0.0  ;;  %v834_v51 = vadd.f32 %v2808_v49, %v3241_v20  ;;  %v825_v52 = vpop.f32.mrb[27].mxu1 }
 0x290   : > { %v877_v53 = vmax.f32 %v823_v48, 0.0  ;;  %v826_v54 = vadd.f32 %v3241_v20, %v825_v52 }
 0x291   : > { %v880_v55 = vmax.f32 %v834_v51, 0.0 }
 0x292   : > { %v878_v56 = vmax.f32 %v826_v54, 0.0 }
 0x293   : > { %v3319_v58 = vpack.c.bf16 %v880_v55, %v879_v50 }
 0x294   : > { %v3321_v59 = vpack.c.bf16 %v878_v56, %v877_v53  ;;  %v2811_v60 = vpop.f32.mrb[28].mxu1 }
 0x295   : > { %v847_v61 = vadd.f32 %v2811_v60, %v3241_v20  ;;  %v838_v62 = vpop.f32.mrb[29].mxu1 }
 0x296   : > { %1378 = vmatmul.mubr.bf16.gmra.mrb[56].mxu0 %v3285_v5  ;;  %1571 = vmatmul.mubr.bf16.gmra.mrb[56].mxu1 %v3285_v5  ;;  %v839_v63 = vadd.f32 %v3241_v20, %v838_v62  ;;  %v2812_v0 = vpop.f32.mrb[30].mxu1 }
 0x297   : > { %1387 = vmatprep.mubr.bf16.mxu0 %v3005_v57  ;;  %1580 = vmatprep.mubr.bf16.mxu1 %v3005_v57  ;;  %v883_v1 = vmax.f32 %v847_v61, 0.0  ;;  %v850_v6 = vadd.f32 %v2812_v0, %v3241_v20  ;;  %v841_v7 = vpop.f32.mrb[31].mxu1 }
 0x298   : > { %v881_v8 = vmax.f32 %v839_v63, 0.0  ;;  %v842_v9 = vadd.f32 %v3241_v20, %v841_v7 }
 0x299   : > { %v884_v10 = vmax.f32 %v850_v6, 0.0 }
 0x29a   : > { %v882_v11 = vmax.f32 %v842_v9, 0.0 }
 0x29b   : > { %v3331_v12 = vpack.c.bf16 %v884_v10, %v883_v1 }
 0x29c   : > { %v3333_v13 = vpack.c.bf16 %v882_v11, %v881_v8 }
 0x29e   : > { %1388 = vmatmul.mubr.bf16.gmra.mrb[60].mxu0 %v3283_v4  ;;  %1581 = vmatmul.mubr.bf16.gmra.mrb[60].mxu1 %v3283_v4 }
 0x29f   : > { %1397 = vmatprep.mubr.bf16.mxu0 %v3005_v57  ;;  %1590 = vmatprep.mubr.bf16.mxu1 %v3005_v57 }
 0x2a6   : > { %1398 = vmatmul.mubr.bf16.gmra.mrb[64].mxu0 %v3297_v26  ;;  %1591 = vmatmul.mubr.bf16.gmra.mrb[64].mxu1 %v3297_v26 }
 0x2a7   : > { %1407 = vmatprep.mubr.bf16.mxu0 %v3005_v57  ;;  %1600 = vmatprep.mubr.bf16.mxu1 %v3005_v57 }
 0x2ae   : > { %1408 = vmatmul.mubr.bf16.gmra.mrb[68].mxu0 %v3295_v25  ;;  %1601 = vmatmul.mubr.bf16.gmra.mrb[68].mxu1 %v3295_v25 }
 0x2af   : > { %1417 = vmatprep.mubr.bf16.mxu0 %v3005_v57  ;;  %1610 = vmatprep.mubr.bf16.mxu1 %v3005_v57 }
 0x2b6   : > { %1418 = vmatmul.mubr.bf16.gmra.mrb[72].mxu0 %v3309_v44  ;;  %1611 = vmatmul.mubr.bf16.gmra.mrb[72].mxu1 %v3309_v44 }
 0x2b7   : > { %1427 = vmatprep.mubr.bf16.mxu0 %v3005_v57  ;;  %1620 = vmatprep.mubr.bf16.mxu1 %v3005_v57 }
 0x2be   : > { %1428 = vmatmul.mubr.bf16.gmra.mrb[76].mxu0 %v3307_v43  ;;  %1621 = vmatmul.mubr.bf16.gmra.mrb[76].mxu1 %v3307_v43 }
 0x2bf   : > { %1437 = vmatprep.mubr.bf16.mxu0 %v3005_v57  ;;  %1630 = vmatprep.mubr.bf16.mxu1 %v3005_v57 }
 0x2c6   : > { %1438 = vmatmul.mubr.bf16.gmra.mrb[80].mxu0 %v3321_v59  ;;  %1631 = vmatmul.mubr.bf16.gmra.mrb[80].mxu1 %v3321_v59 }
 0x2c7   : > { %1447 = vmatprep.mubr.bf16.mxu0 %v3005_v57  ;;  %1640 = vmatprep.mubr.bf16.mxu1 %v3005_v57 }
 0x2ce   : > { %1448 = vmatmul.mubr.bf16.gmra.mrb[84].mxu0 %v3319_v58  ;;  %1641 = vmatmul.mubr.bf16.gmra.mrb[84].mxu1 %v3319_v58 }
 0x2cf   : > { %1457 = vmatprep.mubr.bf16.mxu0 %v3005_v57  ;;  %1650 = vmatprep.mubr.bf16.mxu1 %v3005_v57 }
 0x2d6   : > { %1458 = vmatmul.mubr.bf16.gmra.mrb[88].mxu0 %v3333_v13  ;;  %1651 = vmatmul.mubr.bf16.gmra.mrb[88].mxu1 %v3333_v13 }
 0x2d7   : > { %1467 = vmatprep.mubr.bf16.mxu0 %v3005_v57  ;;  %1660 = vmatprep.mubr.bf16.mxu1 %v3005_v57 }
 0x2de   : > { %1468 = vmatmul.mubr.bf16.gmra.mrb[92].mxu0 %v3331_v12  ;;  %1661 = vmatmul.mubr.bf16.gmra.mrb[92].mxu1 %v3331_v12 }
 0x2df   : > { %1703 = vmatprep.mubr.bf16.mxu0 %v3005_v57  ;;  %1896 = vmatprep.mubr.bf16.mxu1 %v3005_v57 }
 0x2e6   : > { %1704 = vmatmul.mubr.bf16.vlgmr.msra.gmra.mrb[96].mxu0 %v3249_v33  ;;  %1897 = vmatmul.mubr.bf16.vlgmr.msra.gmra.mrb[96].mxu1 %v3249_v33 }
 0x2e7   : > { %1713 = vmatprep.mubr.bf16.mxu0 %v3005_v57  ;;  %1906 = vmatprep.mubr.bf16.mxu1 %v3005_v57 }
 0x2ee   : > { %1714 = vmatmul.mubr.bf16.gmra.mrb[100].mxu0 %v3247_v30  ;;  %1907 = vmatmul.mubr.bf16.gmra.mrb[100].mxu1 %v3247_v30 }
 0x2ef   : > { %1723 = vmatprep.mubr.bf16.mxu0 %v3005_v57  ;;  %1916 = vmatprep.mubr.bf16.mxu1 %v3005_v57 }
 0x2f6   : > { %1724 = vmatmul.mubr.bf16.gmra.mrb[104].mxu0 %v3261_v3  ;;  %1917 = vmatmul.mubr.bf16.gmra.mrb[104].mxu1 %v3261_v3 }
 0x2f7   : > { %1733 = vmatprep.mubr.bf16.mxu0 %v3005_v57  ;;  %1926 = vmatprep.mubr.bf16.mxu1 %v3005_v57 }
 0x2fe   : > { %1734 = vmatmul.mubr.bf16.gmra.mrb[108].mxu0 %v3259_v2  ;;  %1927 = vmatmul.mubr.bf16.gmra.mrb[108].mxu1 %v3259_v2 }
 0x2ff   : > { %1743 = vmatprep.mubr.bf16.mxu0 %v3005_v57  ;;  %1936 = vmatprep.mubr.bf16.mxu1 %v3005_v57 }
 0x306   : > { %1744 = vmatmul.mubr.bf16.gmra.mrb[112].mxu0 %v3273_v37  ;;  %1937 = vmatmul.mubr.bf16.gmra.mrb[112].mxu1 %v3273_v37 }
 0x307   : > { %1753 = vmatprep.mubr.bf16.mxu0 %v3005_v57  ;;  %1946 = vmatprep.mubr.bf16.mxu1 %v3005_v57 }
 0x30e   : > { %1754 = vmatmul.mubr.bf16.gmra.mrb[116].mxu0 %v3271_v36  ;;  %1947 = vmatmul.mubr.bf16.gmra.mrb[116].mxu1 %v3271_v36 }
 0x30f   : > { %1763 = vmatprep.mubr.bf16.mxu0 %v3005_v57  ;;  %1956 = vmatprep.mubr.bf16.mxu1 %v3005_v57 }
 0x316   : > { %1764 = vmatmul.mubr.bf16.gmra.mrb[120].mxu0 %v3285_v5  ;;  %1957 = vmatmul.mubr.bf16.gmra.mrb[120].mxu1 %v3285_v5 }
 0x317   : > { %1773 = vmatprep.mubr.bf16.mxu0 %v3005_v57  ;;  %1966 = vmatprep.mubr.bf16.mxu1 %v3005_v57 }
 0x31e   : > { %1774 = vmatmul.mubr.bf16.gmra.mrb[124].mxu0 %v3283_v4  ;;  %1967 = vmatmul.mubr.bf16.gmra.mrb[124].mxu1 %v3283_v4 }
 0x31f   : > { %1783 = vmatprep.mubr.bf16.mxu0 %v3005_v57  ;;  %1976 = vmatprep.mubr.bf16.mxu1 %v3005_v57 }
 0x326   : > { %1784 = vmatmul.mubr.bf16.gmra.mrb[128].mxu0 %v3297_v26  ;;  %1977 = vmatmul.mubr.bf16.gmra.mrb[128].mxu1 %v3297_v26 }
 0x327   : > { %1793 = vmatprep.mubr.bf16.mxu0 %v3005_v57  ;;  %1986 = vmatprep.mubr.bf16.mxu1 %v3005_v57 }
 0x32e   : > { %1794 = vmatmul.mubr.bf16.gmra.mrb[132].mxu0 %v3295_v25  ;;  %1987 = vmatmul.mubr.bf16.gmra.mrb[132].mxu1 %v3295_v25 }
 0x32f   : > { %1803 = vmatprep.mubr.bf16.mxu0 %v3005_v57  ;;  %1996 = vmatprep.mubr.bf16.mxu1 %v3005_v57 }
 0x336   : > { %1804 = vmatmul.mubr.bf16.gmra.mrb[136].mxu0 %v3309_v44  ;;  %1997 = vmatmul.mubr.bf16.gmra.mrb[136].mxu1 %v3309_v44 }
 0x337   : > { %1813 = vmatprep.mubr.bf16.mxu0 %v3005_v57  ;;  %2006 = vmatprep.mubr.bf16.mxu1 %v3005_v57 }
 0x339   : > { %v1319_v20 = vpop.f32.mrb[32].mxu0  ;;  %v1512_v30 = vpop.f32.mrb[32].mxu1 }
 0x33a   : > { %v1321_v33 = vpop.f32.mrb[33].mxu0  ;;  %v1514_v2 = vpop.f32.mrb[33].mxu1 }
 0x33b   : > { %v1323_v3 = vpop.f32.mrb[34].mxu0  ;;  %v1516_v36 = vpop.f32.mrb[34].mxu1 }
 0x33c   : > { %v2057_v37 = vmax.f32 %v1319_v20, %v1323_v3  ;;  %v2131_v4 = vmax.f32 %v1512_v30, %v1516_v36  ;;  %v1325_v5 = vpop.f32.mrb[35].mxu0  ;;  %v1518_v14 = vpop.f32.mrb[35].mxu1 }
 0x33d   : > { %v2094_v15 = vmax.f32 %v1321_v33, %v1325_v5  ;;  %v2168_v16 = vmax.f32 %v1514_v2, %v1518_v14 }
 0x33e   : > { %1814 = vmatmul.mubr.bf16.gmra.mrb[140].mxu0 %v3307_v43  ;;  %2007 = vmatmul.mubr.bf16.gmra.mrb[140].mxu1 %v3307_v43 }
 0x33f   : > { %1823 = vmatprep.mubr.bf16.mxu0 %v3005_v57  ;;  %2016 = vmatprep.mubr.bf16.mxu1 %v3005_v57 }
 0x341   : > { %v1329_v17 = vpop.f32.mrb[36].mxu0  ;;  %v1522_v18 = vpop.f32.mrb[36].mxu1 }
 0x342   : > { %v2058_v19 = vmax.f32 %v2057_v37, %v1329_v17  ;;  %v2132_v21 = vmax.f32 %v2131_v4, %v1522_v18  ;;  %v1331_v22 = vpop.f32.mrb[37].mxu0  ;;  %v1524_v23 = vpop.f32.mrb[37].mxu1 }
 0x343   : > { %v2095_v24 = vmax.f32 %v2094_v15, %v1331_v22  ;;  %v2169_v25 = vmax.f32 %v2168_v16, %v1524_v23  ;;  %v1333_v26 = vpop.f32.mrb[38].mxu0  ;;  %v1526_v28 = vpop.f32.mrb[38].mxu1 }
 0x344   : > { %v2059_v29 = vmax.f32 %v2058_v19, %v1333_v26  ;;  %v2133_v31 = vmax.f32 %v2132_v21, %v1526_v28  ;;  %v1335_v32 = vpop.f32.mrb[39].mxu0  ;;  %v1528_v34 = vpop.f32.mrb[39].mxu1 }
 0x345   : > { %v2096_v35 = vmax.f32 %v2095_v24, %v1335_v32  ;;  %v2170_v38 = vmax.f32 %v2169_v25, %v1528_v34 }
 0x346   : > { %1824 = vmatmul.mubr.bf16.gmra.mrb[144].mxu0 %v3321_v59  ;;  %2017 = vmatmul.mubr.bf16.gmra.mrb[144].mxu1 %v3321_v59 }
 0x347   : > { %1833 = vmatprep.mubr.bf16.mxu0 %v3005_v57  ;;  %2026 = vmatprep.mubr.bf16.mxu1 %v3005_v57 }
 0x349   : > { %v1339_v27 = vpop.f32.mrb[40].mxu0  ;;  %v1532_v39 = vpop.f32.mrb[40].mxu1 }
 0x34a   : > { %v2060_v40 = vmax.f32 %v2059_v29, %v1339_v27  ;;  %v2134_v41 = vmax.f32 %v2133_v31, %v1532_v39  ;;  %v1341_v42 = vpop.f32.mrb[41].mxu0  ;;  %v1534_v43 = vpop.f32.mrb[41].mxu1 }
 0x34b   : > { %v2097_v44 = vmax.f32 %v2096_v35, %v1341_v42  ;;  %v2171_v45 = vmax.f32 %v2170_v38, %v1534_v43  ;;  %v1343_v46 = vpop.f32.mrb[42].mxu0  ;;  %v1536_v47 = vpop.f32.mrb[42].mxu1 }
 0x34c   : > { %v2061_v48 = vmax.f32 %v2060_v40, %v1343_v46  ;;  %v2135_v49 = vmax.f32 %v2134_v41, %v1536_v47  ;;  %v1345_v50 = vpop.f32.mrb[43].mxu0  ;;  %v1538_v51 = vpop.f32.mrb[43].mxu1 }
 0x34d   : > { %v2098_v52 = vmax.f32 %v2097_v44, %v1345_v50  ;;  %v2172_v53 = vmax.f32 %v2171_v45, %v1538_v51 }
 0x34e   : > { %1834 = vmatmul.mubr.bf16.gmra.mrb[148].mxu0 %v3319_v58  ;;  %2027 = vmatmul.mubr.bf16.gmra.mrb[148].mxu1 %v3319_v58 }
 0x34f   : > { %1843 = vmatprep.mubr.bf16.mxu0 %v3005_v57  ;;  %2036 = vmatprep.mubr.bf16.mxu1 %v3005_v57 }
 0x351   : > { %v1349_v54 = vpop.f32.mrb[44].mxu0  ;;  %v1542_v55 = vpop.f32.mrb[44].mxu1 }
 0x352   : > { %v2062_v56 = vmax.f32 %v2061_v48, %v1349_v54  ;;  %v2136_v59 = vmax.f32 %v2135_v49, %v1542_v55  ;;  %v1351_v60 = vpop.f32.mrb[45].mxu0  ;;  %v1544_v61 = vpop.f32.mrb[45].mxu1 }
 0x353   : > { %v2099_v62 = vmax.f32 %v2098_v52, %v1351_v60  ;;  %v2173_v63 = vmax.f32 %v2172_v53, %v1544_v61  ;;  %v1353_v0 = vpop.f32.mrb[46].mxu0  ;;  %v1546_v1 = vpop.f32.mrb[46].mxu1 }
 0x354   : > { %v2063_v6 = vmax.f32 %v2062_v56, %v1353_v0  ;;  %v2137_v7 = vmax.f32 %v2136_v59, %v1546_v1  ;;  %v1355_v8 = vpop.f32.mrb[47].mxu0  ;;  %v1548_v9 = vpop.f32.mrb[47].mxu1 }
 0x355   : > { %v2100_v10 = vmax.f32 %v2099_v62, %v1355_v8  ;;  %v2174_v58 = vmax.f32 %v2173_v63, %v1548_v9 }
 0x356   : > { %1844 = vmatmul.mubr.bf16.gmra.mrb[152].mxu0 %v3333_v13  ;;  %2037 = vmatmul.mubr.bf16.gmra.mrb[152].mxu1 %v3333_v13 }
 0x357   : > { %1853 = vmatprep.mubr.bf16.mxu0 %v3005_v57  ;;  %2046 = vmatprep.mubr.bf16.mxu1 %v3005_v57 }
 0x359   : > { %v1359_v11 = vpop.f32.mrb[48].mxu0  ;;  %v1552_v20 = vpop.f32.mrb[48].mxu1 }
 0x35a   : > { %v2064_v30 = vmax.f32 %v2063_v6, %v1359_v11  ;;  %v2138_v33 = vmax.f32 %v2137_v7, %v1552_v20  ;;  %v1361_v2 = vpop.f32.mrb[49].mxu0  ;;  %v1554_v3 = vpop.f32.mrb[49].mxu1 }
 0x35b   : > { %v2101_v36 = vmax.f32 %v2100_v10, %v1361_v2  ;;  %v2175_v37 = vmax.f32 %v2174_v58, %v1554_v3  ;;  %v1363_v4 = vpop.f32.mrb[50].mxu0  ;;  %v1556_v5 = vpop.f32.mrb[50].mxu1 }
 0x35c   : > { %v2065_v14 = vmax.f32 %v2064_v30, %v1363_v4  ;;  %v2139_v15 = vmax.f32 %v2138_v33, %v1556_v5  ;;  %v1365_v16 = vpop.f32.mrb[51].mxu0  ;;  %v1558_v17 = vpop.f32.mrb[51].mxu1 }
 0x35d   : > { %v2102_v18 = vmax.f32 %v2101_v36, %v1365_v16  ;;  %v2176_v13 = vmax.f32 %v2175_v37, %v1558_v17 }
 0x35e   : > { %1854 = vmatmul.mubr.bf16.gmra.mrb[156].mxu0 %v3331_v12  ;;  %2047 = vmatmul.mubr.bf16.gmra.mrb[156].mxu1 %v3331_v12 }
 0x361   : > { %v1369_v57 = vpop.f32.mrb[52].mxu0  ;;  %v1562_v19 = vpop.f32.mrb[52].mxu1 }
 0x362   : > { %v2066_v21 = vmax.f32 %v2065_v14, %v1369_v57  ;;  %v2140_v22 = vmax.f32 %v2139_v15, %v1562_v19  ;;  %v1371_v23 = vpop.f32.mrb[53].mxu0  ;;  %v1564_v24 = vpop.f32.mrb[53].mxu1 }
 0x363   : > { %v2103_v25 = vmax.f32 %v2102_v18, %v1371_v23  ;;  %v2177_v26 = vmax.f32 %v2176_v13, %v1564_v24  ;;  %v1373_v28 = vpop.f32.mrb[54].mxu0  ;;  %v1566_v29 = vpop.f32.mrb[54].mxu1 }
 0x364   : > { %v2067_v31 = vmax.f32 %v2066_v21, %v1373_v28  ;;  %v2141_v32 = vmax.f32 %v2140_v22, %v1566_v29  ;;  %v1375_v34 = vpop.f32.mrb[55].mxu0  ;;  %v1568_v35 = vpop.f32.mrb[55].mxu1 }
 0x365   : > { %v2104_v38 = vmax.f32 %v2103_v25, %v1375_v34  ;;  %v2178_v27 = vmax.f32 %v2177_v26, %v1568_v35 }
 0x369   : > { %v1379_v39 = vpop.f32.mrb[56].mxu0  ;;  %v1572_v40 = vpop.f32.mrb[56].mxu1 }
 0x36a   : > { %v2068_v41 = vmax.f32 %v2067_v31, %v1379_v39  ;;  %v2142_v12 = vmax.f32 %v2141_v32, %v1572_v40  ;;  %v1381_v42 = vpop.f32.mrb[57].mxu0  ;;  %v1574_v43 = vpop.f32.mrb[57].mxu1 }
 0x36b   : > { %v2105_v44 = vmax.f32 %v2104_v38, %v1381_v42  ;;  %v2179_v45 = vmax.f32 %v2178_v27, %v1574_v43  ;;  %v1383_v46 = vpop.f32.mrb[58].mxu0  ;;  %v1576_v47 = vpop.f32.mrb[58].mxu1 }
 0x36c   : > { %v2069_v48 = vmax.f32 %v2068_v41, %v1383_v46  ;;  %v2143_v49 = vmax.f32 %v2142_v12, %v1576_v47  ;;  %v1385_v50 = vpop.f32.mrb[59].mxu0  ;;  %v1578_v51 = vpop.f32.mrb[59].mxu1 }
 0x36d   : > { %v2106_v52 = vmax.f32 %v2105_v44, %v1385_v50  ;;  %v2180_v53 = vmax.f32 %v2179_v45, %v1578_v51 }
 0x371   : > { %v1389_v54 = vpop.f32.mrb[60].mxu0  ;;  %v1582_v55 = vpop.f32.mrb[60].mxu1 }
 0x372   : > { %v2070_v56 = vmax.f32 %v2069_v48, %v1389_v54  ;;  %v2144_v59 = vmax.f32 %v2143_v49, %v1582_v55  ;;  %v1391_v60 = vpop.f32.mrb[61].mxu0  ;;  %v1584_v61 = vpop.f32.mrb[61].mxu1 }
 0x373   : > { %v2107_v62 = vmax.f32 %v2106_v52, %v1391_v60  ;;  %v2181_v63 = vmax.f32 %v2180_v53, %v1584_v61  ;;  %v1393_v0 = vpop.f32.mrb[62].mxu0  ;;  %v1586_v1 = vpop.f32.mrb[62].mxu1 }
 0x374   : > { %v2071_v6 = vmax.f32 %v2070_v56, %v1393_v0  ;;  %v2145_v7 = vmax.f32 %v2144_v59, %v1586_v1  ;;  %v1395_v8 = vpop.f32.mrb[63].mxu0  ;;  %v1588_v9 = vpop.f32.mrb[63].mxu1 }
 0x375   : > { %v2108_v10 = vmax.f32 %v2107_v62, %v1395_v8  ;;  %v2182_v58 = vmax.f32 %v2181_v63, %v1588_v9 }
 0x379   : > { %v1399_v11 = vpop.f32.mrb[64].mxu0  ;;  %v1592_v20 = vpop.f32.mrb[64].mxu1 }
 0x37a   : > { %v2072_v30 = vmax.f32 %v2071_v6, %v1399_v11  ;;  %v2146_v33 = vmax.f32 %v2145_v7, %v1592_v20  ;;  %v1401_v2 = vpop.f32.mrb[65].mxu0  ;;  %v1594_v3 = vpop.f32.mrb[65].mxu1 }
 0x37b   : > { %v2109_v36 = vmax.f32 %v2108_v10, %v1401_v2  ;;  %v2183_v37 = vmax.f32 %v2182_v58, %v1594_v3  ;;  %v1403_v4 = vpop.f32.mrb[66].mxu0  ;;  %v1596_v5 = vpop.f32.mrb[66].mxu1 }
 0x37c   : > { %v2073_v14 = vmax.f32 %v2072_v30, %v1403_v4  ;;  %v2147_v15 = vmax.f32 %v2146_v33, %v1596_v5  ;;  %v1405_v16 = vpop.f32.mrb[67].mxu0  ;;  %v1598_v17 = vpop.f32.mrb[67].mxu1 }
 0x37d   : > { %v2110_v18 = vmax.f32 %v2109_v36, %v1405_v16  ;;  %v2184_v13 = vmax.f32 %v2183_v37, %v1598_v17 }
 0x381   : > { %v1409_v57 = vpop.f32.mrb[68].mxu0  ;;  %v1602_v19 = vpop.f32.mrb[68].mxu1 }
 0x382   : > { %v2074_v21 = vmax.f32 %v2073_v14, %v1409_v57  ;;  %v2148_v22 = vmax.f32 %v2147_v15, %v1602_v19  ;;  %v1411_v23 = vpop.f32.mrb[69].mxu0  ;;  %v1604_v24 = vpop.f32.mrb[69].mxu1 }
 0x383   : > { %v2111_v25 = vmax.f32 %v2110_v18, %v1411_v23  ;;  %v2185_v26 = vmax.f32 %v2184_v13, %v1604_v24  ;;  %v1413_v28 = vpop.f32.mrb[70].mxu0  ;;  %v1606_v29 = vpop.f32.mrb[70].mxu1 }
 0x384   : > { %v2075_v31 = vmax.f32 %v2074_v21, %v1413_v28  ;;  %v2149_v32 = vmax.f32 %v2148_v22, %v1606_v29  ;;  %v1415_v34 = vpop.f32.mrb[71].mxu0  ;;  %v1608_v35 = vpop.f32.mrb[71].mxu1 }
 0x385   : > { %v2112_v38 = vmax.f32 %v2111_v25, %v1415_v34  ;;  %v2186_v27 = vmax.f32 %v2185_v26, %v1608_v35 }
 0x389   : > { %v1419_v39 = vpop.f32.mrb[72].mxu0  ;;  %v1612_v40 = vpop.f32.mrb[72].mxu1 }
 0x38a   : > { %v2076_v41 = vmax.f32 %v2075_v31, %v1419_v39  ;;  %v2150_v12 = vmax.f32 %v2149_v32, %v1612_v40  ;;  %v1421_v42 = vpop.f32.mrb[73].mxu0  ;;  %v1614_v43 = vpop.f32.mrb[73].mxu1 }
 0x38b   : > { %v2113_v44 = vmax.f32 %v2112_v38, %v1421_v42  ;;  %v2187_v45 = vmax.f32 %v2186_v27, %v1614_v43  ;;  %v1423_v46 = vpop.f32.mrb[74].mxu0  ;;  %v1616_v47 = vpop.f32.mrb[74].mxu1 }
 0x38c   : > { %v2077_v48 = vmax.f32 %v2076_v41, %v1423_v46  ;;  %v2151_v49 = vmax.f32 %v2150_v12, %v1616_v47  ;;  %v1425_v50 = vpop.f32.mrb[75].mxu0  ;;  %v1618_v51 = vpop.f32.mrb[75].mxu1 }
 0x38d   : > { %v2114_v52 = vmax.f32 %v2113_v44, %v1425_v50  ;;  %v2188_v53 = vmax.f32 %v2187_v45, %v1618_v51 }
 0x391   : > { %v1429_v54 = vpop.f32.mrb[76].mxu0  ;;  %v1622_v55 = vpop.f32.mrb[76].mxu1 }
 0x392   : > { %v2078_v56 = vmax.f32 %v2077_v48, %v1429_v54  ;;  %v2152_v59 = vmax.f32 %v2151_v49, %v1622_v55  ;;  %v1431_v60 = vpop.f32.mrb[77].mxu0  ;;  %v1624_v61 = vpop.f32.mrb[77].mxu1 }
 0x393   : > { %v2115_v62 = vmax.f32 %v2114_v52, %v1431_v60  ;;  %v2189_v63 = vmax.f32 %v2188_v53, %v1624_v61  ;;  %v1433_v0 = vpop.f32.mrb[78].mxu0  ;;  %v1626_v1 = vpop.f32.mrb[78].mxu1 }
 0x394   : > { %v2079_v6 = vmax.f32 %v2078_v56, %v1433_v0  ;;  %v2153_v7 = vmax.f32 %v2152_v59, %v1626_v1  ;;  %v1435_v8 = vpop.f32.mrb[79].mxu0  ;;  %v1628_v9 = vpop.f32.mrb[79].mxu1 }
 0x395   : > { %v2116_v10 = vmax.f32 %v2115_v62, %v1435_v8  ;;  %v2190_v58 = vmax.f32 %v2189_v63, %v1628_v9 }
 0x399   : > { %v1439_v11 = vpop.f32.mrb[80].mxu0  ;;  %v1632_v20 = vpop.f32.mrb[80].mxu1 }
 0x39a   : > { %v2080_v30 = vmax.f32 %v2079_v6, %v1439_v11  ;;  %v2154_v33 = vmax.f32 %v2153_v7, %v1632_v20  ;;  %v1441_v2 = vpop.f32.mrb[81].mxu0  ;;  %v1634_v3 = vpop.f32.mrb[81].mxu1 }
 0x39b   : > { %v2117_v36 = vmax.f32 %v2116_v10, %v1441_v2  ;;  %v2191_v37 = vmax.f32 %v2190_v58, %v1634_v3  ;;  %v1443_v4 = vpop.f32.mrb[82].mxu0  ;;  %v1636_v5 = vpop.f32.mrb[82].mxu1  ;;  %v2372_v3 = vlaneseq }
 0x39c   : > { %v2081_v14 = vmax.f32 %v2080_v30, %v1443_v4  ;;  %v2155_v15 = vmax.f32 %v2154_v33, %v1636_v5  ;;  %v1445_v16 = vpop.f32.mrb[83].mxu0  ;;  %v1638_v17 = vpop.f32.mrb[83].mxu1  ;;  %v3006_v33 = vmov 1966171168  }
 0x39d   : > { %v2118_v18 = vmax.f32 %v2117_v36, %v1445_v16  ;;  %v2192_v13 = vmax.f32 %v2191_v37, %v1638_v17  ;;  %v2370_v2 = vunpack.c.l.s4 %v3006_v33 }
 0x3a1   : > { %v1449_v57 = vpop.f32.mrb[84].mxu0  ;;  %v1642_v19 = vpop.f32.mrb[84].mxu1 }
 0x3a2   : > { %v2082_v21 = vmax.f32 %v2081_v14, %v1449_v57  ;;  %v2156_v22 = vmax.f32 %v2155_v15, %v1642_v19  ;;  %v1451_v23 = vpop.f32.mrb[85].mxu0  ;;  %v1644_v24 = vpop.f32.mrb[85].mxu1 }
 0x3a3   : > { %v2119_v25 = vmax.f32 %v2118_v18, %v1451_v23  ;;  %v2193_v26 = vmax.f32 %v2192_v13, %v1644_v24  ;;  %v1453_v28 = vpop.f32.mrb[86].mxu0  ;;  %v1646_v29 = vpop.f32.mrb[86].mxu1 }
 0x3a4   : > { %v2083_v31 = vmax.f32 %v2082_v21, %v1453_v28  ;;  %v2157_v32 = vmax.f32 %v2156_v22, %v1646_v29  ;;  %v1455_v34 = vpop.f32.mrb[87].mxu0  ;;  %v1648_v35 = vpop.f32.mrb[87].mxu1  ;;  %v2371_v21 = vunpack.c.0.s8 %v2370_v2  ;;  %v2373_v22 = vshrl.u32 %v2372_v3, 7 }
 0x3a5   : > { %v2120_v38 = vmax.f32 %v2119_v25, %v1455_v34  ;;  %v2194_v27 = vmax.f32 %v2193_v26, %v1648_v35 }
 0x3a9   : > { %v1459_v39 = vpop.f32.mrb[88].mxu0  ;;  %v1652_v40 = vpop.f32.mrb[88].mxu1 }
 0x3aa   : > { %v2084_v41 = vmax.f32 %v2083_v31, %v1459_v39  ;;  %v2158_v12 = vmax.f32 %v2157_v32, %v1652_v40  ;;  %v1461_v42 = vpop.f32.mrb[89].mxu0  ;;  %v1654_v43 = vpop.f32.mrb[89].mxu1 }
 0x3ab   : > { %v2121_v44 = vmax.f32 %v2120_v38, %v1461_v42  ;;  %v2195_v45 = vmax.f32 %v2194_v27, %v1654_v43  ;;  %v1463_v46 = vpop.f32.mrb[90].mxu0  ;;  %v1656_v47 = vpop.f32.mrb[90].mxu1 }
 0x3ac   : > { %v2085_v48 = vmax.f32 %v2084_v41, %v1463_v46  ;;  %v2159_v49 = vmax.f32 %v2158_v12, %v1656_v47  ;;  %v1465_v50 = vpop.f32.mrb[91].mxu0  ;;  %v1658_v51 = vpop.f32.mrb[91].mxu1  ;;  %v3433_v46 = vsub.s32 %v2371_v21, %v2373_v22 }
 0x3ad   : > { %v2122_v52 = vmax.f32 %v2121_v44, %v1465_v50  ;;  %v2196_v53 = vmax.f32 %v2195_v45, %v1658_v51 }
 0x3b1   : > { %v1469_v54 = vpop.f32.mrb[92].mxu0  ;;  %v1662_v55 = vpop.f32.mrb[92].mxu1 }
 0x3b2   : > { %v2086_v56 = vmax.f32 %v2085_v48, %v1469_v54  ;;  %v2160_v59 = vmax.f32 %v2159_v49, %v1662_v55  ;;  %v1471_v60 = vpop.f32.mrb[93].mxu0  ;;  %v1664_v61 = vpop.f32.mrb[93].mxu1 }
 0x3b3   : > { %v2123_v62 = vmax.f32 %v2122_v52, %v1471_v60  ;;  %v2197_v63 = vmax.f32 %v2196_v53, %v1664_v61  ;;  %v1473_v0 = vpop.f32.mrb[94].mxu0  ;;  %v1666_v1 = vpop.f32.mrb[94].mxu1 }
 0x3b4   : > { %v2087_v6 = vmax.f32 %v2086_v56, %v1473_v0  ;;  %v2161_v7 = vmax.f32 %v2160_v59, %v1666_v1  ;;  %v1475_v8 = vpop.f32.mrb[95].mxu0  ;;  %v1668_v9 = vpop.f32.mrb[95].mxu1 }
 0x3b5   : > { %v2124_v10 = vmax.f32 %v2123_v62, %v1475_v8  ;;  %v2198_v58 = vmax.f32 %v2197_v63, %v1668_v9 }
 0x3b6   : > { %v2088_v11 = vrot.slane %v2087_v6, 4  ;;  %v2162_v20 = vrot.slane %v2161_v7, 4 }
 0x3b7   : > { %v2125_v30 = vrot.slane %v2124_v10, 4  ;;  %v2199_v36 = vrot.slane %v2198_v58, 4 }
 0x3b8   : > { %v2089_v37 = vmax.f32 %v2087_v6, %v2088_v11  ;;  %v2163_v4 = vmax.f32 %v2161_v7, %v2162_v20 }
 0x3b9   : > { %v2126_v5 = vmax.f32 %v2124_v10, %v2125_v30  ;;  %v2200_v14 = vmax.f32 %v2198_v58, %v2199_v36  ;;  %v1705_v15 = vpop.f32.mrb[96].mxu0  ;;  %v1898_v16 = vpop.f32.mrb[96].mxu1 }
 0x3ba   : > { %v2090_v17 = vrot.slane %v2089_v37, 2  ;;  %v2164_v18 = vrot.slane %v2163_v4, 2  ;;  %v1707_v13 = vpop.f32.mrb[97].mxu0  ;;  %v1900_v57 = vpop.f32.mrb[97].mxu1 }
 0x3bb   : > { %v2127_v19 = vrot.slane %v2126_v5, 2  ;;  %v2201_v23 = vrot.slane %v2200_v14, 2  ;;  %v1709_v24 = vpop.f32.mrb[98].mxu0  ;;  %v1902_v25 = vpop.f32.mrb[98].mxu1 }
 0x3bc   : > { %v2091_v26 = vmax.f32 %v2089_v37, %v2090_v17  ;;  %v2165_v28 = vmax.f32 %v2163_v4, %v2164_v18  ;;  %v2205_v29 = vmax.f32 %v1705_v15, %v1709_v24  ;;  %v2279_v31 = vmax.f32 %v1898_v16, %v1902_v25  ;;  %v1711_v32 = vpop.f32.mrb[99].mxu0  ;;  %v1904_v34 = vpop.f32.mrb[99].mxu1 }
 0x3bd   : > { %v2128_v35 = vmax.f32 %v2126_v5, %v2127_v19  ;;  %v2202_v38 = vmax.f32 %v2200_v14, %v2201_v23  ;;  %v2242_v27 = vmax.f32 %v1707_v13, %v1711_v32  ;;  %v2316_v39 = vmax.f32 %v1900_v57, %v1904_v34 }
 0x3be   : > { %v2092_v40 = vrot.slane %v2091_v26, 1  ;;  %v2166_v41 = vrot.slane %v2165_v28, 1 }
 0x3bf   : > { %v2129_v12 = vrot.slane %v2128_v35, 1  ;;  %v2203_v42 = vrot.slane %v2202_v38, 1 }
 0x3c0   : > { %v2093_v43 = vmax.f32 %v2091_v26, %v2092_v40  ;;  %v2167_v44 = vmax.f32 %v2165_v28, %v2166_v41 }
 0x3c1   : > { %v2130_v45 = vmax.f32 %v2128_v35, %v2129_v12  ;;  %v2204_v47 = vmax.f32 %v2202_v38, %v2203_v42  ;;  %v1715_v48 = vpop.f32.mrb[100].mxu0  ;;  %v1908_v49 = vpop.f32.mrb[100].mxu1 }
 0x3c2   : > { %v2206_v50 = vmax.f32 %v2205_v29, %v1715_v48  ;;  %v2280_v51 = vmax.f32 %v2279_v31, %v1908_v49  ;;  %v1717_v52 = vpop.f32.mrb[101].mxu0  ;;  %v1910_v53 = vpop.f32.mrb[101].mxu1 }
 0x3c3   : > { %v2365_v54 = vcombine.low %v2093_v43, %v2130_v45  ;;  %v2366_v55 = vcombine.low %v2167_v44, %v2204_v47  ;;  %v2243_v56 = vmax.f32 %v2242_v27, %v1717_v52  ;;  %v2317_v59 = vmax.f32 %v2316_v39, %v1910_v53  ;;  %v1719_v60 = vpop.f32.mrb[102].mxu0  ;;  %v1912_v61 = vpop.f32.mrb[102].mxu1 }
 0x3c4   : > { %v2207_v62 = vmax.f32 %v2206_v50, %v1719_v60  ;;  %v2281_v63 = vmax.f32 %v2280_v51, %v1912_v61  ;;  %v1721_v0 = vpop.f32.mrb[103].mxu0  ;;  %v1914_v1 = vpop.f32.mrb[103].mxu1 }
 0x3c5   : > { %v3436_v6 = vrot.slane %v2365_v54, %v3433_v46  ;;  %v3439_v7 = vrot.slane %v2366_v55, %v3433_v46  ;;  %v2244_v8 = vmax.f32 %v2243_v56, %v1721_v0  ;;  %v2318_v9 = vmax.f32 %v2317_v59, %v1914_v1 }
 0x3c7   : > { %v2397_v10 = vcombine.low %v3436_v6, %v3439_v7 }
 0x3c9   : > { %v1725_v58 = vpop.f32.mrb[104].mxu0  ;;  %v1918_v11 = vpop.f32.mrb[104].mxu1 }
 0x3ca   : > { %v2208_v20 = vmax.f32 %v2207_v62, %v1725_v58  ;;  %v2282_v30 = vmax.f32 %v2281_v63, %v1918_v11  ;;  %v1727_v33 = vpop.f32.mrb[105].mxu0  ;;  %v1920_v2 = vpop.f32.mrb[105].mxu1 }
 0x3cb   : > { %v2245_v3 = vmax.f32 %v2244_v8, %v1727_v33  ;;  %v2319_v36 = vmax.f32 %v2318_v9, %v1920_v2  ;;  %v1729_v37 = vpop.f32.mrb[106].mxu0  ;;  %v1922_v4 = vpop.f32.mrb[106].mxu1 }
 0x3cc   : > { %v2209_v5 = vmax.f32 %v2208_v20, %v1729_v37  ;;  %v2283_v14 = vmax.f32 %v2282_v30, %v1922_v4  ;;  %v1731_v15 = vpop.f32.mrb[107].mxu0  ;;  %v1924_v16 = vpop.f32.mrb[107].mxu1 }
 0x3cd   : > { %v2246_v17 = vmax.f32 %v2245_v3, %v1731_v15  ;;  %v2320_v18 = vmax.f32 %v2319_v36, %v1924_v16 }
 0x3d1   : > { %v1735_v13 = vpop.f32.mrb[108].mxu0  ;;  %v1928_v57 = vpop.f32.mrb[108].mxu1 }
 0x3d2   : > { %v2210_v19 = vmax.f32 %v2209_v5, %v1735_v13  ;;  %v2284_v21 = vmax.f32 %v2283_v14, %v1928_v57  ;;  %v1737_v22 = vpop.f32.mrb[109].mxu0  ;;  %v1930_v23 = vpop.f32.mrb[109].mxu1 }
 0x3d3   : > { %v2247_v24 = vmax.f32 %v2246_v17, %v1737_v22  ;;  %v2321_v25 = vmax.f32 %v2320_v18, %v1930_v23  ;;  %v1739_v26 = vpop.f32.mrb[110].mxu0  ;;  %v1932_v28 = vpop.f32.mrb[110].mxu1 }
 0x3d4   : > { %v2211_v29 = vmax.f32 %v2210_v19, %v1739_v26  ;;  %v2285_v31 = vmax.f32 %v2284_v21, %v1932_v28  ;;  %v1741_v32 = vpop.f32.mrb[111].mxu0  ;;  %v1934_v34 = vpop.f32.mrb[111].mxu1 }
 0x3d5   : > { %v2248_v35 = vmax.f32 %v2247_v24, %v1741_v32  ;;  %v2322_v38 = vmax.f32 %v2321_v25, %v1934_v34 }
 0x3d9   : > { %v1745_v27 = vpop.f32.mrb[112].mxu0  ;;  %v1938_v39 = vpop.f32.mrb[112].mxu1 }
 0x3da   : > { %v2212_v40 = vmax.f32 %v2211_v29, %v1745_v27  ;;  %v2286_v41 = vmax.f32 %v2285_v31, %v1938_v39  ;;  %v1747_v12 = vpop.f32.mrb[113].mxu0  ;;  %v1940_v42 = vpop.f32.mrb[113].mxu1 }
 0x3db   : > { %v2249_v43 = vmax.f32 %v2248_v35, %v1747_v12  ;;  %v2323_v44 = vmax.f32 %v2322_v38, %v1940_v42  ;;  %v1749_v45 = vpop.f32.mrb[114].mxu0  ;;  %v1942_v47 = vpop.f32.mrb[114].mxu1 }
 0x3dc   : > { %v2213_v48 = vmax.f32 %v2212_v40, %v1749_v45  ;;  %v2287_v49 = vmax.f32 %v2286_v41, %v1942_v47  ;;  %v1751_v50 = vpop.f32.mrb[115].mxu0  ;;  %v1944_v51 = vpop.f32.mrb[115].mxu1 }
 0x3dd   : > { %v2250_v52 = vmax.f32 %v2249_v43, %v1751_v50  ;;  %v2324_v53 = vmax.f32 %v2323_v44, %v1944_v51 }
 0x3e1   : > { %v1755_v54 = vpop.f32.mrb[116].mxu0  ;;  %v1948_v55 = vpop.f32.mrb[116].mxu1 }
 0x3e2   : > { %v2214_v56 = vmax.f32 %v2213_v48, %v1755_v54  ;;  %v2288_v59 = vmax.f32 %v2287_v49, %v1948_v55  ;;  %v1757_v60 = vpop.f32.mrb[117].mxu0  ;;  %v1950_v61 = vpop.f32.mrb[117].mxu1 }
 0x3e3   : > { %v2251_v62 = vmax.f32 %v2250_v52, %v1757_v60  ;;  %v2325_v63 = vmax.f32 %v2324_v53, %v1950_v61  ;;  %v1759_v0 = vpop.f32.mrb[118].mxu0  ;;  %v1952_v1 = vpop.f32.mrb[118].mxu1 }
 0x3e4   : > { %v2215_v8 = vmax.f32 %v2214_v56, %v1759_v0  ;;  %v2289_v9 = vmax.f32 %v2288_v59, %v1952_v1  ;;  %v1761_v58 = vpop.f32.mrb[119].mxu0  ;;  %v1954_v11 = vpop.f32.mrb[119].mxu1 }
 0x3e5   : > { %v2252_v20 = vmax.f32 %v2251_v62, %v1761_v58  ;;  %v2326_v30 = vmax.f32 %v2325_v63, %v1954_v11 }
 0x3e9   : > { %v1765_v33 = vpop.f32.mrb[120].mxu0  ;;  %v1958_v2 = vpop.f32.mrb[120].mxu1 }
 0x3ea   : > { %v2216_v3 = vmax.f32 %v2215_v8, %v1765_v33  ;;  %v2290_v36 = vmax.f32 %v2289_v9, %v1958_v2  ;;  %v1767_v37 = vpop.f32.mrb[121].mxu0  ;;  %v1960_v4 = vpop.f32.mrb[121].mxu1 }
 0x3eb   : > { %v2253_v5 = vmax.f32 %v2252_v20, %v1767_v37  ;;  %v2327_v14 = vmax.f32 %v2326_v30, %v1960_v4  ;;  %v1769_v15 = vpop.f32.mrb[122].mxu0  ;;  %v1962_v16 = vpop.f32.mrb[122].mxu1 }
 0x3ec   : > { %v2217_v17 = vmax.f32 %v2216_v3, %v1769_v15  ;;  %v2291_v18 = vmax.f32 %v2290_v36, %v1962_v16  ;;  %v1771_v13 = vpop.f32.mrb[123].mxu0  ;;  %v1964_v57 = vpop.f32.mrb[123].mxu1 }
 0x3ed   : > { %v2254_v19 = vmax.f32 %v2253_v5, %v1771_v13  ;;  %v2328_v21 = vmax.f32 %v2327_v14, %v1964_v57 }
 0x3f1   : > { %v1775_v22 = vpop.f32.mrb[124].mxu0  ;;  %v1968_v23 = vpop.f32.mrb[124].mxu1 }
 0x3f2   : > { %v2218_v24 = vmax.f32 %v2217_v17, %v1775_v22  ;;  %v2292_v25 = vmax.f32 %v2291_v18, %v1968_v23  ;;  %v1777_v26 = vpop.f32.mrb[125].mxu0  ;;  %v1970_v28 = vpop.f32.mrb[125].mxu1 }
 0x3f3   : > { %v2255_v29 = vmax.f32 %v2254_v19, %v1777_v26  ;;  %v2329_v31 = vmax.f32 %v2328_v21, %v1970_v28  ;;  %v1779_v32 = vpop.f32.mrb[126].mxu0  ;;  %v1972_v34 = vpop.f32.mrb[126].mxu1 }
 0x3f4   : > { %v2219_v35 = vmax.f32 %v2218_v24, %v1779_v32  ;;  %v2293_v38 = vmax.f32 %v2292_v25, %v1972_v34  ;;  %v1781_v27 = vpop.f32.mrb[127].mxu0  ;;  %v1974_v39 = vpop.f32.mrb[127].mxu1 }
 0x3f5   : > { %v2256_v40 = vmax.f32 %v2255_v29, %v1781_v27  ;;  %v2330_v41 = vmax.f32 %v2329_v31, %v1974_v39 }
 0x3f9   : > { %v1785_v12 = vpop.f32.mrb[128].mxu0  ;;  %v1978_v42 = vpop.f32.mrb[128].mxu1 }
 0x3fa   : > { %v2220_v43 = vmax.f32 %v2219_v35, %v1785_v12  ;;  %v2294_v44 = vmax.f32 %v2293_v38, %v1978_v42  ;;  %v1787_v45 = vpop.f32.mrb[129].mxu0  ;;  %v1980_v47 = vpop.f32.mrb[129].mxu1 }
 0x3fb   : > { %v2257_v48 = vmax.f32 %v2256_v40, %v1787_v45  ;;  %v2331_v49 = vmax.f32 %v2330_v41, %v1980_v47  ;;  %v1789_v50 = vpop.f32.mrb[130].mxu0  ;;  %v1982_v51 = vpop.f32.mrb[130].mxu1 }
 0x3fc   : > { %v2221_v52 = vmax.f32 %v2220_v43, %v1789_v50  ;;  %v2295_v53 = vmax.f32 %v2294_v44, %v1982_v51  ;;  %v1791_v54 = vpop.f32.mrb[131].mxu0  ;;  %v1984_v55 = vpop.f32.mrb[131].mxu1 }
 0x3fd   : > { %v2258_v56 = vmax.f32 %v2257_v48, %v1791_v54  ;;  %v2332_v59 = vmax.f32 %v2331_v49, %v1984_v55 }
 0x401   : > { %v1795_v60 = vpop.f32.mrb[132].mxu0  ;;  %v1988_v61 = vpop.f32.mrb[132].mxu1 }
 0x402   : > { %v2222_v62 = vmax.f32 %v2221_v52, %v1795_v60  ;;  %v2296_v63 = vmax.f32 %v2295_v53, %v1988_v61  ;;  %v1797_v0 = vpop.f32.mrb[133].mxu0  ;;  %v1990_v1 = vpop.f32.mrb[133].mxu1 }
 0x403   : > { %v2259_v8 = vmax.f32 %v2258_v56, %v1797_v0  ;;  %v2333_v9 = vmax.f32 %v2332_v59, %v1990_v1  ;;  %v1799_v58 = vpop.f32.mrb[134].mxu0  ;;  %v1992_v11 = vpop.f32.mrb[134].mxu1 }
 0x404   : > { %v2223_v20 = vmax.f32 %v2222_v62, %v1799_v58  ;;  %v2297_v30 = vmax.f32 %v2296_v63, %v1992_v11  ;;  %v1801_v33 = vpop.f32.mrb[135].mxu0  ;;  %v1994_v2 = vpop.f32.mrb[135].mxu1 }
 0x405   : > { %v2260_v3 = vmax.f32 %v2259_v8, %v1801_v33  ;;  %v2334_v36 = vmax.f32 %v2333_v9, %v1994_v2 }
 0x409   : > { %v1805_v37 = vpop.f32.mrb[136].mxu0  ;;  %v1998_v4 = vpop.f32.mrb[136].mxu1 }
 0x40a   : > { %v2224_v5 = vmax.f32 %v2223_v20, %v1805_v37  ;;  %v2298_v14 = vmax.f32 %v2297_v30, %v1998_v4  ;;  %v1807_v15 = vpop.f32.mrb[137].mxu0  ;;  %v2000_v16 = vpop.f32.mrb[137].mxu1 }
 0x40b   : > { %v2261_v17 = vmax.f32 %v2260_v3, %v1807_v15  ;;  %v2335_v18 = vmax.f32 %v2334_v36, %v2000_v16  ;;  %v1809_v13 = vpop.f32.mrb[138].mxu0  ;;  %v2002_v57 = vpop.f32.mrb[138].mxu1 }
 0x40c   : > { %v2225_v19 = vmax.f32 %v2224_v5, %v1809_v13  ;;  %v2299_v21 = vmax.f32 %v2298_v14, %v2002_v57  ;;  %v1811_v22 = vpop.f32.mrb[139].mxu0  ;;  %v2004_v23 = vpop.f32.mrb[139].mxu1 }
 0x40d   : > { %v2262_v24 = vmax.f32 %v2261_v17, %v1811_v22  ;;  %v2336_v25 = vmax.f32 %v2335_v18, %v2004_v23 }
 0x411   : > { %v1815_v26 = vpop.f32.mrb[140].mxu0  ;;  %v2008_v28 = vpop.f32.mrb[140].mxu1 }
 0x412   : > { %v2226_v29 = vmax.f32 %v2225_v19, %v1815_v26  ;;  %v2300_v31 = vmax.f32 %v2299_v21, %v2008_v28  ;;  %v1817_v32 = vpop.f32.mrb[141].mxu0  ;;  %v2010_v34 = vpop.f32.mrb[141].mxu1 }
 0x413   : > { %v2263_v35 = vmax.f32 %v2262_v24, %v1817_v32  ;;  %v2337_v38 = vmax.f32 %v2336_v25, %v2010_v34  ;;  %v1819_v27 = vpop.f32.mrb[142].mxu0  ;;  %v2012_v39 = vpop.f32.mrb[142].mxu1 }
 0x414   : > { %v2227_v40 = vmax.f32 %v2226_v29, %v1819_v27  ;;  %v2301_v41 = vmax.f32 %v2300_v31, %v2012_v39  ;;  %v1821_v12 = vpop.f32.mrb[143].mxu0  ;;  %v2014_v42 = vpop.f32.mrb[143].mxu1 }
 0x415   : > { %v2264_v43 = vmax.f32 %v2263_v35, %v1821_v12  ;;  %v2338_v44 = vmax.f32 %v2337_v38, %v2014_v42 }
 0x419   : > { %v1825_v45 = vpop.f32.mrb[144].mxu0  ;;  %v2018_v47 = vpop.f32.mrb[144].mxu1 }
 0x41a   : > { %v2228_v48 = vmax.f32 %v2227_v40, %v1825_v45  ;;  %v2302_v49 = vmax.f32 %v2301_v41, %v2018_v47  ;;  %v1827_v50 = vpop.f32.mrb[145].mxu0  ;;  %v2020_v51 = vpop.f32.mrb[145].mxu1 }
 0x41b   : > { %v2265_v52 = vmax.f32 %v2264_v43, %v1827_v50  ;;  %v2339_v53 = vmax.f32 %v2338_v44, %v2020_v51  ;;  %v1829_v54 = vpop.f32.mrb[146].mxu0  ;;  %v2022_v55 = vpop.f32.mrb[146].mxu1 }
 0x41c   : > { %v2229_v56 = vmax.f32 %v2228_v48, %v1829_v54  ;;  %v2303_v59 = vmax.f32 %v2302_v49, %v2022_v55  ;;  %v1831_v60 = vpop.f32.mrb[147].mxu0  ;;  %v2024_v61 = vpop.f32.mrb[147].mxu1 }
 0x41d   : > { %v2266_v62 = vmax.f32 %v2265_v52, %v1831_v60  ;;  %v2340_v63 = vmax.f32 %v2339_v53, %v2024_v61 }
 0x421   : > { %v1835_v0 = vpop.f32.mrb[148].mxu0  ;;  %v2028_v1 = vpop.f32.mrb[148].mxu1 }
 0x422   : > { %v2230_v8 = vmax.f32 %v2229_v56, %v1835_v0  ;;  %v2304_v9 = vmax.f32 %v2303_v59, %v2028_v1  ;;  %v1837_v58 = vpop.f32.mrb[149].mxu0  ;;  %v2030_v11 = vpop.f32.mrb[149].mxu1 }
 0x423   : > { %v2267_v20 = vmax.f32 %v2266_v62, %v1837_v58  ;;  %v2341_v30 = vmax.f32 %v2340_v63, %v2030_v11  ;;  %v1839_v33 = vpop.f32.mrb[150].mxu0  ;;  %v2032_v2 = vpop.f32.mrb[150].mxu1 }
 0x424   : > { %v2231_v3 = vmax.f32 %v2230_v8, %v1839_v33  ;;  %v2305_v36 = vmax.f32 %v2304_v9, %v2032_v2  ;;  %v1841_v37 = vpop.f32.mrb[151].mxu0  ;;  %v2034_v4 = vpop.f32.mrb[151].mxu1 }
 0x425   : > { %v2268_v5 = vmax.f32 %v2267_v20, %v1841_v37  ;;  %v2342_v14 = vmax.f32 %v2341_v30, %v2034_v4 }
 0x429   : > { %v1845_v15 = vpop.f32.mrb[152].mxu0  ;;  %v2038_v16 = vpop.f32.mrb[152].mxu1 }
 0x42a   : > { %v2232_v17 = vmax.f32 %v2231_v3, %v1845_v15  ;;  %v2306_v18 = vmax.f32 %v2305_v36, %v2038_v16  ;;  %v1847_v13 = vpop.f32.mrb[153].mxu0  ;;  %v2040_v57 = vpop.f32.mrb[153].mxu1  ;;  %v2405_v16 = vrot.slane %v2397_v10, %v3433_v46 }
 0x42b   : > { %v2269_v19 = vmax.f32 %v2268_v5, %v1847_v13  ;;  %v2343_v21 = vmax.f32 %v2342_v14, %v2040_v57  ;;  %v1849_v22 = vpop.f32.mrb[154].mxu0  ;;  %v2042_v23 = vpop.f32.mrb[154].mxu1 }
 0x42c   : > { %v2233_v24 = vmax.f32 %v2232_v17, %v1849_v22  ;;  %v2307_v25 = vmax.f32 %v2306_v18, %v2042_v23  ;;  %v1851_v26 = vpop.f32.mrb[155].mxu0  ;;  %v2044_v28 = vpop.f32.mrb[155].mxu1 }
 0x42d   : > { %v2270_v29 = vmax.f32 %v2269_v19, %v1851_v26  ;;  %v2344_v31 = vmax.f32 %v2343_v21, %v2044_v28 }
 0x431   : > { %v1855_v32 = vpop.f32.mrb[156].mxu0  ;;  %v2048_v34 = vpop.f32.mrb[156].mxu1 }
 0x432   : > { %v2234_v35 = vmax.f32 %v2233_v24, %v1855_v32  ;;  %v2308_v38 = vmax.f32 %v2307_v25, %v2048_v34  ;;  %v1857_v27 = vpop.f32.mrb[157].mxu0  ;;  %v2050_v39 = vpop.f32.mrb[157].mxu1 }
 0x433   : > { %v2271_v40 = vmax.f32 %v2270_v29, %v1857_v27  ;;  %v2345_v41 = vmax.f32 %v2344_v31, %v2050_v39  ;;  %v1859_v12 = vpop.f32.mrb[158].mxu0  ;;  %v2052_v42 = vpop.f32.mrb[158].mxu1 }
 0x434   : > { %v2235_v43 = vmax.f32 %v2234_v35, %v1859_v12  ;;  %v2309_v44 = vmax.f32 %v2308_v38, %v2052_v42  ;;  %v1861_v45 = vpop.f32.mrb[159].mxu0  ;;  %v2054_v47 = vpop.f32.mrb[159].mxu1 }
 0x435   : > { %v2272_v48 = vmax.f32 %v2271_v40, %v1861_v45  ;;  %v2346_v49 = vmax.f32 %v2345_v41, %v2054_v47 }
 0x436   : > { %v2236_v50 = vrot.slane %v2235_v43, 4  ;;  %v2310_v51 = vrot.slane %v2309_v44, 4 }
 0x437   : > { %v2273_v52 = vrot.slane %v2272_v48, 4  ;;  %v2347_v53 = vrot.slane %v2346_v49, 4 }
 0x438   : > { %v2237_v54 = vmax.f32 %v2235_v43, %v2236_v50  ;;  %v2311_v55 = vmax.f32 %v2309_v44, %v2310_v51 }
 0x439   : > { %v2274_v56 = vmax.f32 %v2272_v48, %v2273_v52  ;;  %v2348_v59 = vmax.f32 %v2346_v49, %v2347_v53 }
 0x43a   : > { %v2238_v60 = vrot.slane %v2237_v54, 2  ;;  %v2312_v61 = vrot.slane %v2311_v55, 2 }
 0x43b   : > { %v2275_v62 = vrot.slane %v2274_v56, 2  ;;  %v2349_v63 = vrot.slane %v2348_v59, 2 }
 0x43c   : > { %v2239_v0 = vmax.f32 %v2237_v54, %v2238_v60  ;;  %v2313_v1 = vmax.f32 %v2311_v55, %v2312_v61 }
 0x43d   : > { %v2276_v8 = vmax.f32 %v2274_v56, %v2275_v62  ;;  %v2350_v9 = vmax.f32 %v2348_v59, %v2349_v63 }
 0x43e   : > { %v2240_v58 = vrot.slane %v2239_v0, 1  ;;  %v2314_v11 = vrot.slane %v2313_v1, 1 }
 0x43f   : > { %v2277_v20 = vrot.slane %v2276_v8, 1  ;;  %v2351_v30 = vrot.slane %v2350_v9, 1 }
 0x440   : > { %v2241_v33 = vmax.f32 %v2239_v0, %v2240_v58  ;;  %v2315_v2 = vmax.f32 %v2313_v1, %v2314_v11 }
 0x441   : > { %v2278_v3 = vmax.f32 %v2276_v8, %v2277_v20  ;;  %v2352_v36 = vmax.f32 %v2350_v9, %v2351_v30 }
 0x443   : > { %v2367_v37 = vcombine.low %v2241_v33, %v2278_v3  ;;  %v2368_v4 = vcombine.low %v2315_v2, %v2352_v36 }
 0x445   : > { %v2389_v5 = vrot.slane %v2367_v37, %v3433_v46  ;;  %v2396_v14 = vrot.slane %v2368_v4, %v3433_v46 }
 0x447   : > { %v2398_v15 = vcombine.low %v2389_v5, %v2396_v14 }
 0x449   : > { %v2412_v17 = vrot.slane %v2398_v15, %v3433_v46 }
 0x44b   : > { %v2413_v18 = vcombine.low %v2405_v16, %v2412_v17 }
 0x44d   : > { %2415 = vst [vmem:[%s282_s28] sm:$0xff] %v2413_v18 }
 0x44e   : > { %2931 = shalt.err (!%p2928_p6)
}
 0x44f   : > { %s2932_s15 = scalar_lea.hbm %s3455_s16, 128  ;;  %s2936_s11 = scalar_lea.hbm %s3508_s6, 256 }
 0x450   : > { %p2933_p7 = scmp.ne.s32.totalorder %s3455_s16, %s2932_s15  ;;  %p2937_p0 = scmp.lt.u32.totalorder %s3455_s16, %s3508_s6 }
 0x451   : > { %p2938_p2 = scmp.lt.u32.totalorder %s2936_s11, %s2932_s15  ;;  %p2940_p8 = scmp.lt.u32.totalorder %s2932_s15, %s3455_s16 }
 0x452   : > { %p2934_p9 = pnand %p2933_p7, %p3520_p10 }
 0x453   : > { %p2939_p4 = por %p2938_p2, %p2937_p0 }
 0x454   : > { %p2935_p12 = pneg %p2934_p9 }
 0x455   : > { %p2941_p11 = por %p2940_p8, %p2939_p4 }
 0x457   : > { %p2942_p13 = pnand %p2941_p11, %p2935_p12 }
 0x459   : > { %2945 = shalt.err (!%p2942_p13)
}
 0x45a   : > { %2818 = dma.vmem_to_hbm [thread:$0]  (%p3520_p10), %s3457_s30, 128, %s3455_s16, %s2482_s24  }
 0x45b PF: > { %p2830_p1 = scmp.ge.s32.totalorder %s3000_s26, 2  ;;  %s2508_s8 = sand.u32 1, %s2980_s21  }
 0x45c   : > { %p3521_p3 = scmp.ne.s32.totalorder %s3514_s9, 0  ;;  %s2509_s13 = scalar_lea.sflag [#allocation4], %s2508_s8 }
 0x45e   : > { %p2825_p5 = pnand %p2830_p1, %p3521_p3 }
 0x460   : > { %2975 = dma.done.wait (!%p2825_p5), %s2509_s13, 128  }
 0x461   : > { %2977 = vsyncadd (!%p2825_p5), %s2509_s13, 4294967168  ;;  %s20_s26 = sadd.s32 1, %s3000_s26   ;;  %s3522_s21 = smov %s2984_s22 }
 0x462   : > { %p17_p6 = scmp.ge.s32.totalorder %s20_s26, 4   ;;  %s3523_s22 = smov %s2988_s23 }
 0x463   : > { %s3524_s23 = smov %s3096_s10  ;;  %s3525_s24 = smov %s2996_s25 }
 0x464   : > { %s3526_s25 = smov %s3528_s29  ;;  %19 = sbr.rel (!%p17_p6) target bundleno = 5 (0x5), region = 92 }
 0x46b   :  { %2514 = vsyncpa [#allocation3], 1 }
 0x46c   :  { %2516 = vsyncpa [#allocation3 + $0x1], 1 }
 0x46d   :  { %2517 = vsyncpa [#allocation4], 1 }
 0x46e   :  { %2519 = vsyncpa [#allocation4 + $0x1], 1 }

</bundles_post_ra>
